<compile_context>
chip_gen: v5e
topology: v5e:2x2
jax: 0.10.0
libtpu: 0.0.40
codegen_flags: <defaults>
</compile_context>

<pallas_src>
import functools
import math

import numpy as np
import jax
import jax.numpy as jnp
from jax import lax
from jax.experimental import pallas as pl
from jax.experimental.pallas import tpu as pltpu


# -----------------------------------------------------------------------------
# Bitonic sorting-network construction (host-side glue, pure numpy — identical
# semantics to the reference `bitonic_network`).
# -----------------------------------------------------------------------------
def bitonic_network(n):
    IDENTITY_MAP_FACTOR = 0.5
    num_blocks = math.ceil(np.log2(n))
    assert n <= 2 ** num_blocks
    network = []
    for block_idx in range(num_blocks):
        for layer_idx in range(block_idx + 1):
            m = 2 ** (block_idx - layer_idx)
            split_a, split_b = (np.zeros((n, 2 ** num_blocks)), np.zeros((n, 2 ** num_blocks)))
            combine_min, combine_max = (np.zeros((2 ** num_blocks, n)), np.zeros((2 ** num_blocks, n)))
            count = 0
            for i in range(0, 2 ** num_blocks, 2 * m):
                for j in range(m):
                    ix = i + j
                    a, b = (ix, ix + m)
                    if a >= 2 ** num_blocks - n and b >= 2 ** num_blocks - n:
                        split_a[count, a], split_b[count, b] = (1, 1)
                        if ix // 2 ** (block_idx + 1) % 2 == 1:
                            a, b = (b, a)
                        combine_min[a, count], combine_max[b, count] = (1, 1)
                        count += 1
                    elif a < 2 ** num_blocks - n and b < 2 ** num_blocks - n:
                        pass
                    elif a >= 2 ** num_blocks - n and b < 2 ** num_blocks - n:
                        split_a[count, a], split_b[count, a] = (1, 1)
                        combine_min[a, count], combine_max[a, count] = (IDENTITY_MAP_FACTOR, IDENTITY_MAP_FACTOR)
                        count += 1
                    elif a < 2 ** num_blocks - n and b >= 2 ** num_blocks - n:
                        split_a[count, b], split_b[count, b] = (1, 1)
                        combine_min[b, count], combine_max[b, count] = (IDENTITY_MAP_FACTOR, IDENTITY_MAP_FACTOR)
                        count += 1
                    else:
                        assert False
            split_a = split_a[:count, 2 ** num_blocks - n:]
            split_b = split_b[:count, 2 ** num_blocks - n:]
            combine_min = combine_min[2 ** num_blocks - n:, :count]
            combine_max = combine_max[2 ** num_blocks - n:, :count]
            network.append((split_a, split_b, combine_min, combine_max))
    return network


def build_bitonic_stacks(n):
    """Stack all layers and pre-pack the weights for the fused kernel.

    Returns:
      s_cat2: (L, n, 4k) = [sa.T | sb.T | sa.T | sb.T]   so  X_aug @ s_cat2 = [aX|bX|aX|bX]
      c_cat4: (L, 4k, n) = [cmin.T ; cmax.T ; cmax.T ; cmin.T]
              so  ([alpha*aX | alpha*bX | (1-a)*aX | (1-a)*bX]) @ c_cat4
                  = w_min @ cmin.T + w_max @ cmax.T
    """
    assert n > 0 and (n & (n - 1)) == 0, "uniform layer stacking assumes power-of-two sorter_size"
    net = bitonic_network(n)
    k = n // 2
    for sa_, sb_, cmin_, cmax_ in net:
        assert sa_.shape == (k, n) and sb_.shape == (k, n)
        assert cmin_.shape == (n, k) and cmax_.shape == (n, k)
    sa = np.stack([l[0] for l in net]).transpose(0, 2, 1)      # (L, n, k)
    sb = np.stack([l[1] for l in net]).transpose(0, 2, 1)      # (L, n, k)
    cmin = np.stack([l[2] for l in net]).transpose(0, 2, 1)    # (L, k, n)
    cmax = np.stack([l[3] for l in net]).transpose(0, 2, 1)    # (L, k, n)
    s_cat2 = np.concatenate([sa, sb, sa, sb], axis=2)          # (L, n, 4k)
    c_cat4 = np.concatenate([cmin, cmax, cmax, cmin], axis=1)  # (L, 4k, n)
    return jnp.asarray(s_cat2, jnp.float32), jnp.asarray(c_cat4, jnp.float32)


# -----------------------------------------------------------------------------
# Helpers
# -----------------------------------------------------------------------------
def _atan(x):
    # TODO(synk): no native atan lowering assumed for Mosaic; Cephes-style f32
    # argument reduction + odd polynomial (~1 ulp in f32).
    ax = jnp.abs(x)
    sgn = jnp.where(x > 0.0, 1.0, jnp.where(x < 0.0, -1.0, 0.0))
    big = ax > 2.414213562373095
    mid = ax > 0.4142135623730951
    ax_safe = jnp.maximum(ax, 1e-20)
    xr = jnp.where(big, -1.0 / ax_safe, jnp.where(mid, (ax - 1.0) / (ax + 1.0), ax))
    y0 = jnp.where(big, 0.5 * math.pi, jnp.where(mid, 0.25 * math.pi, 0.0))
    z = xr * xr
    p = ((8.05374449538e-2 * z - 1.38776856032e-1) * z + 1.99777106478e-1) * z - 3.33329491539e-1
    return sgn * (y0 + p * z * xr + xr)


def _pick_rows_per_step(batch):
    """Rows per grid step: fill the MXU (M = R*n+8) but keep >= 2 grid steps (v7x megacore)."""
    for r in (8, 6, 4, 3, 2):
        if batch % r == 0 and batch // r >= 2:
            return r
    return 1


# -----------------------------------------------------------------------------
# Fused kernel: risk scores (normalize -> attention -> fc) + diffsort (cauchy).
# One grid step == R batch rows.
# -----------------------------------------------------------------------------
def _fused_kernel(scal_ref,      # SMEM (2,)  [w_attn_time, b_attn]  (trainable scalars)
                  emb_ref,       # (R, D, E)
                  time_ref,      # (R, D, 1)
                  sd_ref,        # (R, 1, S_pad)
                  w_ae_ref,      # (1, E)
                  w_fc_ref,      # (E + S_pad, N)   fused FC weight
                  b_fc_ref,      # (1, N)
                  s_cat2_ref,    # (L, N, 2N)  = [sa.T|sb.T|sa.T|sb.T]
                  c_cat4_ref,    # (L, 2N, N)  = [cmin.T;cmax.T;cmax.T;cmin.T]
                  risk_ref,      # out (R, 1, N)
                  perm_ref,      # out (R, N, N)
                  *, steepness, num_layers, n, rows):
    inv_pi = 1.0 / math.pi
    k = n // 2
    r_n = rows * n
    m_tot = r_n + 8                      # x-rows live at [r_n, r_n + rows); rest is zero pad
    log2n = int(n).bit_length() - 1

    # ---------------- risk scores (batched over `rows` samples) --------------
    w_at = scal_ref[0]
    b_at = scal_ref[1]

    emb = emb_ref[...].astype(jnp.float32)                            # (R, D, E)
    ssq = jnp.sum(emb * emb, axis=-1, keepdims=True)                  # (R, D, 1)
    emb_n = emb * lax.rsqrt(jnp.maximum(ssq, 1e-24))                  # F.normalize(p=2, eps=1e-12)

    # time-aware additive attention over documents (see TODO(synk) at top of file)
    w_ae = w_ae_ref[...].astype(jnp.float32)                          # (1, E)
    scores = jnp.sum(emb_n * w_ae, axis=-1, keepdims=True)            # (R, D, 1)
    scores = scores + time_ref[...].astype(jnp.float32) * w_at + b_at
    scores = scores - jnp.max(scores, axis=1, keepdims=True)
    e = jnp.exp(scores)
    attn = e * pl.reciprocal(jnp.sum(e, axis=1, keepdims=True), approx=False)
    agg = jnp.sum(attn * emb_n, axis=1)                               # (R, E)

    sd = sd_ref[...].astype(jnp.float32)                              # (R, 1, S_pad)
    feat = jnp.concatenate([agg, sd[:, 0, :]], axis=1)                # (R, E + S_pad)
    risk = (jnp.dot(feat, w_fc_ref[...], preferred_element_type=jnp.float32)
            + b_fc_ref[...])                                          # (R, N)
    for r in range(rows):
        risk_ref[r] = risk[r:r + 1, :]

    # ---------------- batched differentiable bitonic sort --------------------
    # X_aug layout: [R stacked identity matrices (R*n rows) ; R x-rows ; zero pad to 8]
    rowi = lax.broadcasted_iota(jnp.int32, (r_n, n), 0)
    coli = lax.broadcasted_iota(jnp.int32, (r_n, n), 1)
    ident = jnp.where((rowi & (n - 1)) == coli, 1.0, 0.0)             # (R*n, n)
    if rows < 8:
        risk8 = jnp.concatenate(
            [risk, jnp.zeros((8 - rows, n), jnp.float32)], axis=0)    # (8, n)
    else:
        risk8 = risk
    x_aug0 = jnp.concatenate([ident, risk8], axis=0)                  # (m_tot, n)

    # per-row sample-id -> one-hot broadcast matrix (m_tot, 8); pad rows of abx are zero,
    # so whichever gate row they pick up is harmless.
    rowm = lax.broadcasted_iota(jnp.int32, (m_tot, 8), 0)
    colm = lax.broadcasted_iota(jnp.int32, (m_tot, 8), 1)
    sid = jnp.where(rowm < r_n, rowm >> log2n, rowm - r_n)
    bcast = jnp.where(sid == colm, 1.0, 0.0)                          # (m_tot, 8)

    def layer(l, x_aug):
        s2 = s_cat2_ref[l]                                            # (n, 4k)
        c4 = c_cat4_ref[l]                                            # (4k, n)
        abx2 = jnp.dot(x_aug, s2, preferred_element_type=jnp.float32)  # (m, 4k) = [aX|bX|aX|bX]
        ab = abx2[r_n:r_n + 8, :]                                     # (8, 4k)  x-rows (+pad)
        d = ab[:, k:2 * k] - ab[:, 0:k]                               # (8, k)   b - a
        alpha = inv_pi * _atan(steepness * d) + 0.5                   # cauchy CDF
        gate8 = jnp.concatenate(
            [alpha, alpha, 1.0 - alpha, 1.0 - alpha], axis=1)         # (8, 4k)
        gate = jnp.dot(bcast, gate8, preferred_element_type=jnp.float32)   # (m, 4k)
        return jnp.dot(gate * abx2, c4, preferred_element_type=jnp.float32)  # (m, n)

    x_fin = lax.fori_loop(0, num_layers, layer, x_aug0)

    # sorted-x rows are intentionally dropped (caller discards the sorted values)
    for r in range(rows):
        perm_ref[r] = x_fin[r * n:(r + 1) * n, :]


# -----------------------------------------------------------------------------
# Wrapper: full SurvivalModel.forward
# -----------------------------------------------------------------------------
def survival_model_forward(doc_emb, time_diffs, structured, params, sorter_size,
                           rows_per_step=None):
    B, D, E = doc_emb.shape
    S = structured.shape[-1]
    s_cat2, c_cat4 = params["sort_net"]
    L, N, K4 = s_cat2.shape
    w_fc_all = params["w_fc_all"]                     # (E + S_pad, N), fused + zero-padded
    s_padded = w_fc_all.shape[0] - E

    R = rows_per_step if rows_per_step is not None else _pick_rows_per_step(B)
    assert 1 <= R <= 8 and B % R == 0
    grid_b = B // R

    kernel = functools.partial(
        _fused_kernel, steepness=2.0 * float(sorter_size),
        num_layers=int(L), n=int(N), rows=int(R))

    # Layout plumbing only: leading dim is the batch grid axis, last two dims of every
    # block equal the full array dims (no (8,128) constraint issues).
    time3 = time_diffs.reshape(B, D, 1)
    sd = structured
    if s_padded > S:
        sd = jnp.concatenate([sd, jnp.zeros((B, s_padded - S), sd.dtype)], axis=1)
    sd3 = sd.reshape(B, 1, s_padded)

    risk3, perm = pl.pallas_call(
        kernel,
        out_shape=(jax.ShapeDtypeStruct((B, 1, N), jnp.float32),
                   jax.ShapeDtypeStruct((B, N, N), jnp.float32)),
        grid=(grid_b,),
        in_specs=[
            pl.BlockSpec(memory_space=pltpu.MemorySpace.SMEM),        # [w_attn_time, b_attn]
            pl.BlockSpec((R, D, E), lambda b: (b, 0, 0)),             # document embeddings
            pl.BlockSpec((R, D, 1), lambda b: (b, 0, 0)),             # time diffs
            pl.BlockSpec((R, 1, s_padded), lambda b: (b, 0, 0)),      # structured (padded)
            pl.BlockSpec((1, E), lambda b: (0, 0)),                   # attention embedding weight
            pl.BlockSpec((E + s_padded, N), lambda b: (0, 0)),        # fused FC weight
            pl.BlockSpec((1, N), lambda b: (0, 0)),                   # fc bias
            pl.BlockSpec((L, N, K4), lambda b: (0, 0, 0)),            # [sa.T|sb.T|sa.T|sb.T]
            pl.BlockSpec((L, K4, N), lambda b: (0, 0, 0)),            # [cmin.T;cmax.T;cmax.T;cmin.T]
        ],
        out_specs=(pl.BlockSpec((R, 1, N), lambda b: (b, 0, 0)),
                   pl.BlockSpec((R, N, N), lambda b: (b, 0, 0))),
        compiler_params=pltpu.CompilerParams(
            dimension_semantics=("parallel",)),   # v7x: grid steps split across both TensorCores
    )(params["attn_scalars"], doc_emb, time3, sd3,
      params["w_attn_emb"], w_fc_all, params["b_fc"], s_cat2, c_cat4)

    return risk3.reshape(B, N), perm


# -----------------------------------------------------------------------------
# Pure-JAX reference (mirrors the PyTorch module) used for a sanity check.
# -----------------------------------------------------------------------------
def _reference_forward(doc_emb, time_diffs, structured, params, sorter_size):
    w_at = params["attn_scalars"][0]
    b_at = params["attn_scalars"][1]
    norm = jnp.sqrt(jnp.sum(doc_emb * doc_emb, axis=2, keepdims=True))
    emb_n = doc_emb / jnp.maximum(norm, 1e-12)
    scores = jnp.einsum("bde,e->bd", emb_n, params["w_attn_emb"][0]) + time_diffs * w_at + b_at
    attn = jax.nn.softmax(scores, axis=1)
    agg = jnp.einsum("bd,bde->be", attn, emb_n)
    risk = agg @ params["w_fc_emb"] + structured @ params["w_fc_struct"] + params["b_fc"]

    n = risk.shape[1]
    steep = 2.0 * sorter_size
    x = risk
    X = jnp.broadcast_to(jnp.eye(n, dtype=jnp.float32), (risk.shape[0], n, n))
    for sa_, sb_, cmin_, cmax_ in bitonic_network(n):
        sa_ = jnp.asarray(sa_, jnp.float32)
        sb_ = jnp.asarray(sb_, jnp.float32)
        cmin_ = jnp.asarray(cmin_, jnp.float32)
        cmax_ = jnp.asarray(cmax_, jnp.float32)
        a, b = x @ sa_.T, x @ sb_.T
        alpha = (1.0 / math.pi) * jnp.arctan(steep * (b - a)) + 0.5
        aX, bX = X @ sa_.T, X @ sb_.T
        w_min = alpha[:, None, :] * aX + (1.0 - alpha)[:, None, :] * bX
        w_max = (1.0 - alpha)[:, None, :] * aX + alpha[:, None, :] * bX
        X = w_max @ cmax_.T + w_min @ cmin_.T
        x = (alpha * a + (1.0 - alpha) * b) @ cmin_.T + ((1.0 - alpha) * a + alpha * b) @ cmax_.T
    return risk, X


if __name__ == "__main__":
    B = 8     # batch (8 rows -> R=4 per grid step, grid=2)
    D = 5     # num_documents
    E = 32    # embedding_dim
    S = 4     # num_structured_features
    N = 32    # sorter_size (module default)

    key = jax.random.PRNGKey(0)
    k1, k2, k3, k4, k5, k6, k7 = jax.random.split(key, 7)

    # inputs
    doc_emb = jax.random.normal(k1, (B, D, E), jnp.float32)
    time_diffs = jax.random.uniform(k2, (B, D), jnp.float32)
    structured = jax.random.normal(k3, (B, S), jnp.float32)

    # deterministic parameter init (Linear-style uniform fan-in bounds)
    lim_a = 1.0 / math.sqrt(E + 1)
    w_attn = jax.random.uniform(k4, (E + 1,), jnp.float32, -lim_a, lim_a)
    b_attn = jax.random.uniform(k5, (), jnp.float32, -lim_a, lim_a)

    lim_f = 1.0 / math.sqrt(E + S)
    w_fc = jax.random.uniform(k6, (N, E + S), jnp.float32, -lim_f, lim_f)   # torch (out, in)
    b_fc = jax.random.uniform(k7, (N,), jnp.float32, -lim_f, lim_f)

    w_fc_emb = jnp.asarray(w_fc[:, :E].T)          # (E, N)
    w_fc_struct = jnp.asarray(w_fc[:, E:].T)       # (S, N)
    s_padded = ((E + S + 7) // 8) * 8 - E          # pad structured so K is a multiple of 8
    pad_rows = s_padded - S
    w_fc_all = jnp.concatenate(
        [w_fc_emb, w_fc_struct] +
        ([jnp.zeros((pad_rows, N), jnp.float32)] if pad_rows > 0 else []), axis=0)

    params = dict(
        w_attn_emb=w_attn[:E].reshape(1, E),
        attn_scalars=jnp.stack([w_attn[E], b_attn]).astype(jnp.float32),  # SMEM: [w_time, bias]
        w_fc_emb=w_fc_emb,
        w_fc_struct=w_fc_struct,
        w_fc_all=w_fc_all,
        b_fc=b_fc.reshape(1, N),
        sort_net=build_bitonic_stacks(N),
    )

    risk_scores, perm_prediction = survival_model_forward(
        doc_emb, time_diffs, structured, params, sorter_size=N)
    jax.block_until_ready((risk_scores, perm_prediction))

    assert risk_scores.shape == (B, N)
    assert perm_prediction.shape == (B, N, N)

    # sanity check against a pure-JAX reference (tolerance is loose on purpose:
    # in-kernel atan polynomial + MXU f32 rounding over 15 serial layers)
    with jax.default_matmul_precision("highest"):
        risk_expected, perm_expected = _reference_forward(
            doc_emb, time_diffs, structured, params, N)
    np.testing.assert_allclose(np.asarray(risk_scores), np.asarray(risk_expected),
                               atol=5e-2, rtol=5e-2)
    np.testing.assert_allclose(np.asarray(perm_prediction), np.asarray(perm_expected),
                               atol=5e-2, rtol=5e-2)

    print("KERNEL_OK")
</pallas_src>

<mosaic_0001>
module attributes {stable_mosaic.version = 11 : i64} {
  func.func @_fused_kernel(%arg0: i32, %arg1: memref<2xf32, #tpu.memory_space<smem>>, %arg2: memref<4x5x32xf32, #tpu.memory_space<vmem>>, %arg3: memref<4x5x1xf32, #tpu.memory_space<vmem>>, %arg4: memref<4x1x8xf32, #tpu.memory_space<vmem>>, %arg5: memref<1x32xf32, #tpu.memory_space<vmem>>, %arg6: memref<40x32xf32, #tpu.memory_space<vmem>>, %arg7: memref<1x32xf32, #tpu.memory_space<vmem>>, %arg8: memref<15x32x64xf32, #tpu.memory_space<vmem>>, %arg9: memref<15x64x32xf32, #tpu.memory_space<vmem>>, %arg10: memref<4x1x32xf32, #tpu.memory_space<vmem>>, %arg11: memref<4x32x32xf32, #tpu.memory_space<vmem>>) attributes {dimension_semantics = [#tpu.dimension_semantics<parallel>], iteration_bounds = array<i64: 2>, scalar_prefetch = 0 : i64, scratch_operands = 0 : i64, tpu.core_type = #tpu.core_type<tc>, window_params = [{transform_indices = @transform_0, window_bounds = array<i64: 2>}, {transform_indices = @transform_1, window_bounds = array<i64: 4, 5, 32>}, {transform_indices = @transform_2, window_bounds = array<i64: 4, 5, 1>}, {transform_indices = @transform_3, window_bounds = array<i64: 4, 1, 8>}, {pipeline_mode = #tpu.pipeline_mode<synchronous>, transform_indices = @transform_4, window_bounds = array<i64: 1, 32>}, {pipeline_mode = #tpu.pipeline_mode<synchronous>, transform_indices = @transform_5, window_bounds = array<i64: 40, 32>}, {pipeline_mode = #tpu.pipeline_mode<synchronous>, transform_indices = @transform_6, window_bounds = array<i64: 1, 32>}, {pipeline_mode = #tpu.pipeline_mode<synchronous>, transform_indices = @transform_7, window_bounds = array<i64: 15, 32, 64>}, {pipeline_mode = #tpu.pipeline_mode<synchronous>, transform_indices = @transform_8, window_bounds = array<i64: 15, 64, 32>}, {transform_indices = @transform_9, window_bounds = array<i64: 4, 1, 32>}, {transform_indices = @transform_10, window_bounds = array<i64: 4, 32, 32>}]} {
    %c0 = arith.constant 0 : index
    %0 = memref.load %arg1[%c0] : memref<2xf32, #tpu.memory_space<smem>>
    %c1 = arith.constant 1 : index
    %1 = memref.load %arg1[%c1] : memref<2xf32, #tpu.memory_space<smem>>
    %c0_0 = arith.constant 0 : index
    %c0_1 = arith.constant 0 : index
    %c0_2 = arith.constant 0 : index
    %2 = vector.load %arg2[%c0_0, %c0_1, %c0_2] : memref<4x5x32xf32, #tpu.memory_space<vmem>>, vector<4x5x32xf32>
    %3 = arith.mulf %2, %2 : vector<4x5x32xf32>
    %cst = arith.constant dense<0.000000e+00> : vector<4x5xf32>
    %4 = vector.multi_reduction <add>, %3, %cst [2] : vector<4x5x32xf32> to vector<4x5xf32>
    %5 = vector.shape_cast %4 : vector<4x5xf32> to vector<4x5x1xf32>
    %cst_3 = arith.constant 1.000000e-24 : f32
    %6 = vector.broadcast %cst_3 : f32 to vector<4x5x1xf32>
    %7 = arith.maximumf %5, %6 : vector<4x5x1xf32>
    %8 = math.rsqrt %7 : vector<4x5x1xf32>
    %9 = vector.broadcast %8 : vector<4x5x1xf32> to vector<4x5x32xf32>
    %10 = arith.mulf %2, %9 : vector<4x5x32xf32>
    %c0_4 = arith.constant 0 : index
    %c0_5 = arith.constant 0 : index
    %11 = vector.load %arg5[%c0_4, %c0_5] : memref<1x32xf32, #tpu.memory_space<vmem>>, vector<1x32xf32>
    %12 = vector.shape_cast %11 : vector<1x32xf32> to vector<1x1x32xf32>
    %13 = vector.broadcast %12 : vector<1x1x32xf32> to vector<4x5x32xf32>
    %14 = arith.mulf %10, %13 : vector<4x5x32xf32>
    %cst_6 = arith.constant dense<0.000000e+00> : vector<4x5xf32>
    %15 = vector.multi_reduction <add>, %14, %cst_6 [2] : vector<4x5x32xf32> to vector<4x5xf32>
    %16 = vector.shape_cast %15 : vector<4x5xf32> to vector<4x5x1xf32>
    %c0_7 = arith.constant 0 : index
    %c0_8 = arith.constant 0 : index
    %c0_9 = arith.constant 0 : index
    %17 = vector.load %arg3[%c0_7, %c0_8, %c0_9] : memref<4x5x1xf32, #tpu.memory_space<vmem>>, vector<4x5x1xf32>
    %18 = vector.broadcast %0 : f32 to vector<4x5x1xf32>
    %19 = arith.mulf %17, %18 : vector<4x5x1xf32>
    %20 = arith.addf %16, %19 : vector<4x5x1xf32>
    %21 = vector.broadcast %1 : f32 to vector<4x5x1xf32>
    %22 = arith.addf %20, %21 : vector<4x5x1xf32>
    %cst_10 = arith.constant dense<0xFF800000> : vector<4x1xf32>
    %23 = vector.multi_reduction <maximumf>, %22, %cst_10 [1] : vector<4x5x1xf32> to vector<4x1xf32>
    %24 = vector.shape_cast %23 : vector<4x1xf32> to vector<4x1x1xf32>
    %25 = vector.broadcast %24 : vector<4x1x1xf32> to vector<4x5x1xf32>
    %26 = arith.subf %22, %25 : vector<4x5x1xf32>
    %27 = math.exp %26 : vector<4x5x1xf32>
    %cst_11 = arith.constant dense<0.000000e+00> : vector<4x1xf32>
    %28 = vector.multi_reduction <add>, %27, %cst_11 [1] : vector<4x5x1xf32> to vector<4x1xf32>
    %29 = vector.shape_cast %28 : vector<4x1xf32> to vector<4x1x1xf32>
    %30 = tpu.reciprocal %29 : vector<4x1x1xf32> -> vector<4x1x1xf32>
    %31 = vector.broadcast %30 : vector<4x1x1xf32> to vector<4x5x1xf32>
    %32 = arith.mulf %27, %31 : vector<4x5x1xf32>
    %33 = vector.broadcast %32 : vector<4x5x1xf32> to vector<4x5x32xf32>
    %34 = arith.mulf %33, %10 : vector<4x5x32xf32>
    %cst_12 = arith.constant dense<0.000000e+00> : vector<4x32xf32>
    %35 = vector.multi_reduction <add>, %34, %cst_12 [1] : vector<4x5x32xf32> to vector<4x32xf32>
    %c0_13 = arith.constant 0 : index
    %c0_14 = arith.constant 0 : index
    %c0_15 = arith.constant 0 : index
    %36 = vector.load %arg4[%c0_13, %c0_14, %c0_15] : memref<4x1x8xf32, #tpu.memory_space<vmem>>, vector<4x1x8xf32>
    %37 = vector.shape_cast %36 : vector<4x1x8xf32> to vector<4x8xf32>
    %38 = tpu.concatenate %35, %37 in 1 : vector<4x32xf32>, vector<4x8xf32> -> vector<4x40xf32>
    %c0_16 = arith.constant 0 : index
    %c0_17 = arith.constant 0 : index
    %39 = vector.load %arg6[%c0_16, %c0_17] : memref<40x32xf32, #tpu.memory_space<vmem>>, vector<40x32xf32>
    %cst_18 = arith.constant dense<0.000000e+00> : vector<4x32xf32>
    %40 = tpu.matmul %38, %39, %cst_18 {dimension_numbers = #tpu.dot_dimension_numbers<[1], [0], [0], [1], [0, 0, 1, 1], [], []>} : vector<4x40xf32>, vector<40x32xf32>, vector<4x32xf32> -> vector<4x32xf32>
    %c0_19 = arith.constant 0 : index
    %c0_20 = arith.constant 0 : index
    %41 = vector.load %arg7[%c0_19, %c0_20] : memref<1x32xf32, #tpu.memory_space<vmem>>, vector<1x32xf32>
    %42 = vector.broadcast %41 : vector<1x32xf32> to vector<4x32xf32>
    %43 = arith.addf %40, %42 : vector<4x32xf32>
    %44 = vector.extract_strided_slice %43 {offsets = [0, 0], sizes = [1, 32], strides = [1, 1]} : vector<4x32xf32> to vector<1x32xf32>
    %c0_21 = arith.constant 0 : index
    %c0_22 = arith.constant 0 : index
    %c0_23 = arith.constant 0 : index
    %45 = vector.load %arg10[%c0_21, %c0_22, %c0_23] : memref<4x1x32xf32, #tpu.memory_space<vmem>>, vector<1x1x32xf32>
    %46 = vector.shape_cast %45 : vector<1x1x32xf32> to vector<1x32xf32>
    %47 = vector.shape_cast %44 : vector<1x32xf32> to vector<1x1x32xf32>
    tpu.vector_store %arg10[%c0_21, %c0_22, %c0_23], %47 {strides = array<i32>} : memref<4x1x32xf32, #tpu.memory_space<vmem>>, vector<1x1x32xf32>,
    %48 = vector.extract_strided_slice %43 {offsets = [1, 0], sizes = [1, 32], strides = [1, 1]} : vector<4x32xf32> to vector<1x32xf32>
    %c1_24 = arith.constant 1 : index
    %c0_25 = arith.constant 0 : index
    %c0_26 = arith.constant 0 : index
    %49 = vector.load %arg10[%c1_24, %c0_25, %c0_26] : memref<4x1x32xf32, #tpu.memory_space<vmem>>, vector<1x1x32xf32>
    %50 = vector.shape_cast %49 : vector<1x1x32xf32> to vector<1x32xf32>
    %51 = vector.shape_cast %48 : vector<1x32xf32> to vector<1x1x32xf32>
    tpu.vector_store %arg10[%c1_24, %c0_25, %c0_26], %51 {strides = array<i32>} : memref<4x1x32xf32, #tpu.memory_space<vmem>>, vector<1x1x32xf32>,
    %52 = vector.extract_strided_slice %43 {offsets = [2, 0], sizes = [1, 32], strides = [1, 1]} : vector<4x32xf32> to vector<1x32xf32>
    %c2 = arith.constant 2 : index
    %c0_27 = arith.constant 0 : index
    %c0_28 = arith.constant 0 : index
    %53 = vector.load %arg10[%c2, %c0_27, %c0_28] : memref<4x1x32xf32, #tpu.memory_space<vmem>>, vector<1x1x32xf32>
    %54 = vector.shape_cast %53 : vector<1x1x32xf32> to vector<1x32xf32>
    %55 = vector.shape_cast %52 : vector<1x32xf32> to vector<1x1x32xf32>
    tpu.vector_store %arg10[%c2, %c0_27, %c0_28], %55 {strides = array<i32>} : memref<4x1x32xf32, #tpu.memory_space<vmem>>, vector<1x1x32xf32>,
    %56 = vector.extract_strided_slice %43 {offsets = [3, 0], sizes = [1, 32], strides = [1, 1]} : vector<4x32xf32> to vector<1x32xf32>
    %c3 = arith.constant 3 : index
    %c0_29 = arith.constant 0 : index
    %c0_30 = arith.constant 0 : index
    %57 = vector.load %arg10[%c3, %c0_29, %c0_30] : memref<4x1x32xf32, #tpu.memory_space<vmem>>, vector<1x1x32xf32>
    %58 = vector.shape_cast %57 : vector<1x1x32xf32> to vector<1x32xf32>
    %59 = vector.shape_cast %56 : vector<1x32xf32> to vector<1x1x32xf32>
    tpu.vector_store %arg10[%c3, %c0_29, %c0_30], %59 {strides = array<i32>} : memref<4x1x32xf32, #tpu.memory_space<vmem>>, vector<1x1x32xf32>,
    %60 = tpu.iota {dimensions = array<i32: 0>} : vector<128x32xi32>
    %61 = tpu.iota {dimensions = array<i32: 1>} : vector<128x32xi32>
    %c31_i32 = arith.constant 31 : i32
    %62 = vector.broadcast %c31_i32 : i32 to vector<128x32xi32>
    %63 = arith.andi %60, %62 : vector<128x32xi32>
    %64 = arith.cmpi eq, %63, %61 : vector<128x32xi32>
    %cst_31 = arith.constant 1.000000e+00 : f32
    %cst_32 = arith.constant 0.000000e+00 : f32
    %65 = vector.broadcast %cst_31 : f32 to vector<128x32xf32>
    %66 = vector.broadcast %cst_32 : f32 to vector<128x32xf32>
    %67 = arith.select %64, %65, %66 : vector<128x32xi1>, vector<128x32xf32>
    %cst_33 = arith.constant 0.000000e+00 : f32
    %68 = vector.broadcast %cst_33 : f32 to vector<4x32xf32>
    %69 = tpu.concatenate %43, %68 in 0 : vector<4x32xf32>, vector<4x32xf32> -> vector<8x32xf32>
    %70 = tpu.concatenate %67, %69 in 0 : vector<128x32xf32>, vector<8x32xf32> -> vector<136x32xf32>
    %71 = tpu.iota {dimensions = array<i32: 0>} : vector<136x8xi32>
    %72 = tpu.iota {dimensions = array<i32: 1>} : vector<136x8xi32>
    %c128_i32 = arith.constant 128 : i32
    %73 = vector.broadcast %c128_i32 : i32 to vector<136x8xi32>
    %74 = arith.cmpi slt, %71, %73 : vector<136x8xi32>
    %c5_i32 = arith.constant 5 : i32
    %75 = vector.broadcast %c5_i32 : i32 to vector<136x8xi32>
    %76 = arith.shrsi %71, %75 : vector<136x8xi32>
    %c128_i32_34 = arith.constant 128 : i32
    %77 = vector.broadcast %c128_i32_34 : i32 to vector<136x8xi32>
    %78 = arith.subi %71, %77 : vector<136x8xi32>
    %79 = arith.select %74, %76, %78 : vector<136x8xi1>, vector<136x8xi32>
    %80 = arith.cmpi eq, %79, %72 : vector<136x8xi32>
    %cst_35 = arith.constant 1.000000e+00 : f32
    %cst_36 = arith.constant 0.000000e+00 : f32
    %81 = vector.broadcast %cst_35 : f32 to vector<136x8xf32>
    %82 = vector.broadcast %cst_36 : f32 to vector<136x8xf32>
    %83 = arith.select %80, %81, %82 : vector<136x8xi1>, vector<136x8xf32>
    %c0_i32 = arith.constant 0 : i32
    %c15_i32 = arith.constant 15 : i32
    %84 = arith.addi %c0_i32, %c15_i32 : i32
    %c1_i32 = arith.constant 1 : i32
    %85 = scf.for %arg12 = %c0_i32 to %84 step %c1_i32 iter_args(%arg13 = %70) -> (vector<136x32xf32>)  : i32 {
      %102 = arith.index_cast %arg12 : i32 to index
      %c0_50 = arith.constant 0 : index
      %c0_51 = arith.constant 0 : index
      %103 = vector.load %arg8[%102, %c0_50, %c0_51] : memref<15x32x64xf32, #tpu.memory_space<vmem>>, vector<1x32x64xf32>
      %104 = vector.shape_cast %103 : vector<1x32x64xf32> to vector<32x64xf32>
      %105 = arith.index_cast %arg12 : i32 to index
      %c0_52 = arith.constant 0 : index
      %c0_53 = arith.constant 0 : index
      %106 = vector.load %arg9[%105, %c0_52, %c0_53] : memref<15x64x32xf32, #tpu.memory_space<vmem>>, vector<1x64x32xf32>
      %107 = vector.shape_cast %106 : vector<1x64x32xf32> to vector<64x32xf32>
      %cst_54 = arith.constant dense<0.000000e+00> : vector<136x64xf32>
      %108 = tpu.matmul %arg13, %104, %cst_54 {dimension_numbers = #tpu.dot_dimension_numbers<[1], [0], [0], [1], [0, 0, 1, 1], [], []>} : vector<136x32xf32>, vector<32x64xf32>, vector<136x64xf32> -> vector<136x64xf32>
      %109 = vector.extract_strided_slice %108 {offsets = [128, 0], sizes = [8, 64], strides = [1, 1]} : vector<136x64xf32> to vector<8x64xf32>
      %110 = vector.extract_strided_slice %109 {offsets = [0, 16], sizes = [8, 16], strides = [1, 1]} : vector<8x64xf32> to vector<8x16xf32>
      %111 = vector.extract_strided_slice %109 {offsets = [0, 0], sizes = [8, 16], strides = [1, 1]} : vector<8x64xf32> to vector<8x16xf32>
      %112 = arith.subf %110, %111 : vector<8x16xf32>
      %cst_55 = arith.constant 6.400000e+01 : f32
      %113 = vector.broadcast %cst_55 : f32 to vector<8x16xf32>
      %114 = arith.mulf %113, %112 : vector<8x16xf32>
      %115 = math.absf %114 : vector<8x16xf32>
      %cst_56 = arith.constant 0.000000e+00 : f32
      %116 = vector.broadcast %cst_56 : f32 to vector<8x16xf32>
      %117 = arith.cmpf ogt, %114, %116 : vector<8x16xf32>
      %cst_57 = arith.constant 0.000000e+00 : f32
      %118 = vector.broadcast %cst_57 : f32 to vector<8x16xf32>
      %119 = arith.cmpf olt, %114, %118 : vector<8x16xf32>
      %cst_58 = arith.constant -1.000000e+00 : f32
      %cst_59 = arith.constant 0.000000e+00 : f32
      %120 = vector.broadcast %cst_58 : f32 to vector<8x16xf32>
      %121 = vector.broadcast %cst_59 : f32 to vector<8x16xf32>
      %122 = arith.select %119, %120, %121 : vector<8x16xi1>, vector<8x16xf32>
      %cst_60 = arith.constant 1.000000e+00 : f32
      %123 = vector.broadcast %cst_60 : f32 to vector<8x16xf32>
      %124 = arith.select %117, %123, %122 : vector<8x16xi1>, vector<8x16xf32>
      %cst_61 = arith.constant 2.41421366 : f32
      %125 = vector.broadcast %cst_61 : f32 to vector<8x16xf32>
      %126 = arith.cmpf ogt, %115, %125 : vector<8x16xf32>
      %cst_62 = arith.constant 0.414213568 : f32
      %127 = vector.broadcast %cst_62 : f32 to vector<8x16xf32>
      %128 = arith.cmpf ogt, %115, %127 : vector<8x16xf32>
      %cst_63 = arith.constant 9.99999968E-21 : f32
      %129 = vector.broadcast %cst_63 : f32 to vector<8x16xf32>
      %130 = arith.maximumf %115, %129 : vector<8x16xf32>
      %cst_64 = arith.constant -1.000000e+00 : f32
      %131 = vector.broadcast %cst_64 : f32 to vector<8x16xf32>
      %132 = arith.divf %131, %130 : vector<8x16xf32>
      %cst_65 = arith.constant 1.000000e+00 : f32
      %133 = vector.broadcast %cst_65 : f32 to vector<8x16xf32>
      %134 = arith.subf %115, %133 : vector<8x16xf32>
      %cst_66 = arith.constant 1.000000e+00 : f32
      %135 = vector.broadcast %cst_66 : f32 to vector<8x16xf32>
      %136 = arith.addf %115, %135 : vector<8x16xf32>
      %137 = arith.divf %134, %136 : vector<8x16xf32>
      %138 = arith.select %128, %137, %115 : vector<8x16xi1>, vector<8x16xf32>
      %139 = arith.select %126, %132, %138 : vector<8x16xi1>, vector<8x16xf32>
      %cst_67 = arith.constant 0.785398185 : f32
      %cst_68 = arith.constant 0.000000e+00 : f32
      %140 = vector.broadcast %cst_67 : f32 to vector<8x16xf32>
      %141 = vector.broadcast %cst_68 : f32 to vector<8x16xf32>
      %142 = arith.select %128, %140, %141 : vector<8x16xi1>, vector<8x16xf32>
      %cst_69 = arith.constant 1.57079637 : f32
      %143 = vector.broadcast %cst_69 : f32 to vector<8x16xf32>
      %144 = arith.select %126, %143, %142 : vector<8x16xi1>, vector<8x16xf32>
      %145 = arith.mulf %139, %139 : vector<8x16xf32>
      %cst_70 = arith.constant 0.0805374458 : f32
      %146 = vector.broadcast %cst_70 : f32 to vector<8x16xf32>
      %147 = arith.mulf %146, %145 : vector<8x16xf32>
      %cst_71 = arith.constant 0.138776854 : f32
      %148 = vector.broadcast %cst_71 : f32 to vector<8x16xf32>
      %149 = arith.subf %147, %148 : vector<8x16xf32>
      %150 = arith.mulf %149, %145 : vector<8x16xf32>
      %cst_72 = arith.constant 0.199777111 : f32
      %151 = vector.broadcast %cst_72 : f32 to vector<8x16xf32>
      %152 = arith.addf %150, %151 : vector<8x16xf32>
      %153 = arith.mulf %152, %145 : vector<8x16xf32>
      %cst_73 = arith.constant 0.333329499 : f32
      %154 = vector.broadcast %cst_73 : f32 to vector<8x16xf32>
      %155 = arith.subf %153, %154 : vector<8x16xf32>
      %156 = arith.mulf %155, %145 : vector<8x16xf32>
      %157 = arith.mulf %156, %139 : vector<8x16xf32>
      %158 = arith.addf %144, %157 : vector<8x16xf32>
      %159 = arith.addf %158, %139 : vector<8x16xf32>
      %160 = arith.mulf %124, %159 : vector<8x16xf32>
      %cst_74 = arith.constant 0.318309873 : f32
      %161 = vector.broadcast %cst_74 : f32 to vector<8x16xf32>
      %162 = arith.mulf %161, %160 : vector<8x16xf32>
      %cst_75 = arith.constant 5.000000e-01 : f32
      %163 = vector.broadcast %cst_75 : f32 to vector<8x16xf32>
      %164 = arith.addf %162, %163 : vector<8x16xf32>
      %cst_76 = arith.constant 1.000000e+00 : f32
      %165 = vector.broadcast %cst_76 : f32 to vector<8x16xf32>
      %166 = arith.subf %165, %164 : vector<8x16xf32>
      %cst_77 = arith.constant 1.000000e+00 : f32
      %167 = vector.broadcast %cst_77 : f32 to vector<8x16xf32>
      %168 = arith.subf %167, %164 : vector<8x16xf32>
      %169 = tpu.concatenate %164, %164, %166, %168 in 1 : vector<8x16xf32>, vector<8x16xf32>, vector<8x16xf32>, vector<8x16xf32> -> vector<8x64xf32>
      %cst_78 = arith.constant dense<0.000000e+00> : vector<136x64xf32>
      %170 = tpu.matmul %83, %169, %cst_78 {dimension_numbers = #tpu.dot_dimension_numbers<[1], [0], [0], [1], [0, 0, 1, 1], [], []>} : vector<136x8xf32>, vector<8x64xf32>, vector<136x64xf32> -> vector<136x64xf32>
      %171 = arith.mulf %170, %108 : vector<136x64xf32>
      %cst_79 = arith.constant dense<0.000000e+00> : vector<136x32xf32>
      %172 = tpu.matmul %171, %107, %cst_79 {dimension_numbers = #tpu.dot_dimension_numbers<[1], [0], [0], [1], [0, 0, 1, 1], [], []>} : vector<136x64xf32>, vector<64x32xf32>, vector<136x32xf32> -> vector<136x32xf32>
      scf.yield %172 : vector<136x32xf32>
    }
    %c15_i32_37 = arith.constant 15 : i32
    %86 = vector.extract_strided_slice %85 {offsets = [0, 0], sizes = [32, 32], strides = [1, 1]} : vector<136x32xf32> to vector<32x32xf32>
    %c0_38 = arith.constant 0 : index
    %c0_39 = arith.constant 0 : index
    %c0_40 = arith.constant 0 : index
    %87 = vector.load %arg11[%c0_38, %c0_39, %c0_40] : memref<4x32x32xf32, #tpu.memory_space<vmem>>, vector<1x32x32xf32>
    %88 = vector.shape_cast %87 : vector<1x32x32xf32> to vector<32x32xf32>
    %89 = vector.shape_cast %86 : vector<32x32xf32> to vector<1x32x32xf32>
    tpu.vector_store %arg11[%c0_38, %c0_39, %c0_40], %89 {strides = array<i32>} : memref<4x32x32xf32, #tpu.memory_space<vmem>>, vector<1x32x32xf32>,
    %90 = vector.extract_strided_slice %85 {offsets = [32, 0], sizes = [32, 32], strides = [1, 1]} : vector<136x32xf32> to vector<32x32xf32>
    %c1_41 = arith.constant 1 : index
    %c0_42 = arith.constant 0 : index
    %c0_43 = arith.constant 0 : index
    %91 = vector.load %arg11[%c1_41, %c0_42, %c0_43] : memref<4x32x32xf32, #tpu.memory_space<vmem>>, vector<1x32x32xf32>
    %92 = vector.shape_cast %91 : vector<1x32x32xf32> to vector<32x32xf32>
    %93 = vector.shape_cast %90 : vector<32x32xf32> to vector<1x32x32xf32>
    tpu.vector_store %arg11[%c1_41, %c0_42, %c0_43], %93 {strides = array<i32>} : memref<4x32x32xf32, #tpu.memory_space<vmem>>, vector<1x32x32xf32>,
    %94 = vector.extract_strided_slice %85 {offsets = [64, 0], sizes = [32, 32], strides = [1, 1]} : vector<136x32xf32> to vector<32x32xf32>
    %c2_44 = arith.constant 2 : index
    %c0_45 = arith.constant 0 : index
    %c0_46 = arith.constant 0 : index
    %95 = vector.load %arg11[%c2_44, %c0_45, %c0_46] : memref<4x32x32xf32, #tpu.memory_space<vmem>>, vector<1x32x32xf32>
    %96 = vector.shape_cast %95 : vector<1x32x32xf32> to vector<32x32xf32>
    %97 = vector.shape_cast %94 : vector<32x32xf32> to vector<1x32x32xf32>
    tpu.vector_store %arg11[%c2_44, %c0_45, %c0_46], %97 {strides = array<i32>} : memref<4x32x32xf32, #tpu.memory_space<vmem>>, vector<1x32x32xf32>,
    %98 = vector.extract_strided_slice %85 {offsets = [96, 0], sizes = [32, 32], strides = [1, 1]} : vector<136x32xf32> to vector<32x32xf32>
    %c3_47 = arith.constant 3 : index
    %c0_48 = arith.constant 0 : index
    %c0_49 = arith.constant 0 : index
    %99 = vector.load %arg11[%c3_47, %c0_48, %c0_49] : memref<4x32x32xf32, #tpu.memory_space<vmem>>, vector<1x32x32xf32>
    %100 = vector.shape_cast %99 : vector<1x32x32xf32> to vector<32x32xf32>
    %101 = vector.shape_cast %98 : vector<32x32xf32> to vector<1x32x32xf32>
    tpu.vector_store %arg11[%c3_47, %c0_48, %c0_49], %101 {strides = array<i32>} : memref<4x32x32xf32, #tpu.memory_space<vmem>>, vector<1x32x32xf32>,
    return
  }
  func.func @transform_0(%arg0: i32) -> i32 {
    %c0_i32 = arith.constant 0 : i32
    %c0_i32_0 = arith.constant 0 : i32
    return %c0_i32 : i32
  }
  func.func @transform_1(%arg0: i32) -> (i32, i32, i32) {
    %c0_i32 = arith.constant 0 : i32
    %c0_i32_0 = arith.constant 0 : i32
    %c0_i32_1 = arith.constant 0 : i32
    return %arg0, %c0_i32, %c0_i32_0 : i32, i32, i32
  }
  func.func @transform_2(%arg0: i32) -> (i32, i32, i32) {
    %c0_i32 = arith.constant 0 : i32
    %c0_i32_0 = arith.constant 0 : i32
    %c0_i32_1 = arith.constant 0 : i32
    return %arg0, %c0_i32, %c0_i32_0 : i32, i32, i32
  }
  func.func @transform_3(%arg0: i32) -> (i32, i32, i32) {
    %c0_i32 = arith.constant 0 : i32
    %c0_i32_0 = arith.constant 0 : i32
    %c0_i32_1 = arith.constant 0 : i32
    return %arg0, %c0_i32, %c0_i32_0 : i32, i32, i32
  }
  func.func @transform_4(%arg0: i32) -> (i32, i32) {
    %c0_i32 = arith.constant 0 : i32
    %c0_i32_0 = arith.constant 0 : i32
    %c0_i32_1 = arith.constant 0 : i32
    return %c0_i32, %c0_i32_0 : i32, i32
  }
  func.func @transform_5(%arg0: i32) -> (i32, i32) {
    %c0_i32 = arith.constant 0 : i32
    %c0_i32_0 = arith.constant 0 : i32
    %c0_i32_1 = arith.constant 0 : i32
    return %c0_i32, %c0_i32_0 : i32, i32
  }
  func.func @transform_6(%arg0: i32) -> (i32, i32) {
    %c0_i32 = arith.constant 0 : i32
    %c0_i32_0 = arith.constant 0 : i32
    %c0_i32_1 = arith.constant 0 : i32
    return %c0_i32, %c0_i32_0 : i32, i32
  }
  func.func @transform_7(%arg0: i32) -> (i32, i32, i32) {
    %c0_i32 = arith.constant 0 : i32
    %c0_i32_0 = arith.constant 0 : i32
    %c0_i32_1 = arith.constant 0 : i32
    %c0_i32_2 = arith.constant 0 : i32
    return %c0_i32, %c0_i32_0, %c0_i32_1 : i32, i32, i32
  }
  func.func @transform_8(%arg0: i32) -> (i32, i32, i32) {
    %c0_i32 = arith.constant 0 : i32
    %c0_i32_0 = arith.constant 0 : i32
    %c0_i32_1 = arith.constant 0 : i32
    %c0_i32_2 = arith.constant 0 : i32
    return %c0_i32, %c0_i32_0, %c0_i32_1 : i32, i32, i32
  }
  func.func @transform_9(%arg0: i32) -> (i32, i32, i32) {
    %c0_i32 = arith.constant 0 : i32
    %c0_i32_0 = arith.constant 0 : i32
    %c0_i32_1 = arith.constant 0 : i32
    return %arg0, %c0_i32, %c0_i32_0 : i32, i32, i32
  }
  func.func @transform_10(%arg0: i32) -> (i32, i32, i32) {
    %c0_i32 = arith.constant 0 : i32
    %c0_i32_0 = arith.constant 0 : i32
    %c0_i32_1 = arith.constant 0 : i32
    return %arg0, %c0_i32, %c0_i32_0 : i32, i32, i32
  }
}

</mosaic_0001>

<bundles_post_ra>
// kernel: tpu_custom_call.1
= control target key start
LH: loop header
LB: loop body
LE: loop exit
PB: predicated region body
PF: predicated region fallthrough
CT: control target
= control target key end

     0   :  { %s3323_s0 = inlined_call_operand.vmem [shape: f32[2], index: 0, kind: input, shape index: {}]   ;;  %s3324_s1 = inlined_call_operand.vmem [shape: f32[8,5,32], index: 1, kind: input, shape index: {}]   ;;  %s3325_s2 = inlined_call_operand.vmem [shape: f32[8,5,1], index: 2, kind: input, shape index: {}]   ;;  %s3326_s3 = inlined_call_operand.vmem [shape: f32[8,1,8], index: 3, kind: input, shape index: {}]   ;;  %s3327_s4 = inlined_call_operand.vmem [shape: f32[1,32], index: 4, kind: input, shape index: {}]   ;;  %s3328_s5 = inlined_call_operand.vmem [shape: f32[40,32], index: 5, kind: input, shape index: {}]   ;;  %s3329_s6 = inlined_call_operand.vmem [shape: f32[1,32], index: 6, kind: input, shape index: {}]   ;;  %s3330_s7 = inlined_call_operand.vmem [shape: f32[15,32,64], index: 7, kind: input, shape index: {}]   ;;  %s3331_s8 = inlined_call_operand.vmem [shape: f32[15,64,32], index: 8, kind: input, shape index: {}]   ;;  %s3332_s9 = inlined_call_operand.hbm [shape: f32[8,1,32], index: 9, kind: output, shape index: {0}]   ;;  %s3333_s10 = inlined_call_operand.hbm [shape: f32[8,32,32], index: 10, kind: output, shape index: {1}]  }
   0x1   :  { %3335 = sst [smem:[#allocation11_spill]] %s3323_s0 }
   0x2   :  { %3336 = sst [smem:[#allocation12_spill]] %s3324_s1 }
   0x3   :  { %3337 = sst [smem:[#allocation13_spill]] %s3325_s2 }
   0x4   :  { %3338 = sst [smem:[#allocation14_spill]] %s3326_s3 }
   0x5   :  { %16 = vsyncpa [#allocation4], 0 }
   0x6   :  { %17 = vsyncpa [#allocation3], 0 }
   0x7   :  { %19 = vsyncpa [#allocation3 + $0x1], 0 }
   0x8   :  { %20 = vsyncpa [#allocation7], 0 }
   0x9   :  { %22 = vsyncpa [#allocation7 + $0x1], 0  ;;  %s2400_s13 = smov 0   ;;  %s2402_s14 = smov 0  }
   0xa   :  { %s2404_s15 = smov 0   ;;  %s2406_s16 = smov 0  }
   0xb LB: > { %s2421_s17 = sadd.s32 4294967295, %s2259_s16   ;;  %s1706_s18 = sadd.s32 4294967294, %s2259_s16   ;;  %s2259_s16 = sphi %s2406_s16, %s3464_s16   ;;  %s2255_s15 = sphi %s2404_s15, %s3463_s15   ;;  %s2251_s14 = sphi %s2402_s14, %s3462_s14   ;;  %s2247_s13 = sphi %s2400_s13, %s3461_s13  }
   0xc   : > { %s2425_s19 = sadd.s32 1, %s2259_s16   ;;  %s239_s20 = sadd.s32 1, %s2255_s15 }
   0xd   : > { %s236_s21 = ssub.s32 %s2259_s16, %s2425_s19  ;;  %p249_p0 = scmp.ne.s32.totalorder %s2255_s15, %s2251_s14 }
   0xe   : > { %p237_p1 = scmp.eq.s32.totalorder %s236_s21, 0  ;;  %p250_p2 = scmp.eq.s32.totalorder %s2421_s17, 1 }
   0xf   : > { %p255_p3 = scmp.ne.s32.totalorder %s2251_s14, %s2247_s13  ;;  %p256_p4 = scmp.eq.s32.totalorder %s1706_s18, 1 }
  0x10   : > { %s2436_s22 = scalar_select %p237_p1, %s2255_s15, %s239_s20  }
  0x11   : > { %p2438_p5 = por %p250_p2, %p249_p0  ;;  %p2442_p6 = por %p256_p4, %p255_p3 }
  0x12   : > { %p1707_p7 = scmp.ge.s32.totalorder %s2259_s16, 1  ;;  %p289_p8 = scmp.lt.s32.totalorder %s2259_s16, 3 }
  0x13   : > { %p1850_p9 = scmp.eq.s32.totalorder %s2421_s17, 0  ;;  %s3341_s0 = sld [smem:[#allocation11_spill]] }
  0x14   : > { %p290_p10 = pnand %p1707_p7, %p289_p8  ;;  %s2333_s28 = smov [#allocation2]  }
  0x16   : > { %p1839_p11 = pneg %p290_p10  ;;  %355 = sbr.rel (%p290_p10) target bundleno = 1504 (0x5e0), region = 56 }
  0x18   : > { %p1840_p12 = pnand %p1850_p9, %p1839_p11 }
  0x19   : > { %s301_s27 = sshll.u32 %s3341_s0, 4  ;;  %s302_s27 = int_to_ptr.vmem [resolvable:$true] %s301_s27 }
  0x1a   : > { %1842 = dma.vmem_to_smem (!%p1840_p12), %s302_s27, 16, %s2333_s28, [#allocation4]  }
  0x1b   : > { %2234 = dma.done.wait (%p1850_p9), [#allocation4], 16  }
  0x1c   : > { %2236 = vsyncadd (%p1850_p9), [#allocation4], 4294967280 }
  0x1d   : > { %362 = sfence }
  0x1e   : > { %s2453_s29 = sshll.u32 %s2421_s17, 2  ;;  %s3342_s3 = sld [smem:[#allocation14_spill]]  ;;  %vm438_vm0 = vcmask 258048   ;;  %v2044_v39 = vld [vmem:[%s3327_s4] ss:$0 sm:$0xff]  ;;  %vm537_vm13 = vcmask 4096  }
  0x1f   : > { %p410_p13 = scmp.lt.s32.totalorder %s2453_s29, 7  ;;  %s3343_s1 = sld [smem:[#allocation12_spill]] }
  0x20   : > { %s428_s12 = sld [smem:[#allocation2]] }
  0x21   : > { %s2457_s30 = scalar_select %p410_p13, %s2453_s29, 7 }
  0x22   : > { %s3344_s2 = sld [smem:[#allocation13_spill]] }
  0x23   : > { %s1715_s11 = sshll.u32 %s2457_s30, 3  ;;  %s1719_s25 = sld [smem:[#allocation2 + $0x1]] }
  0x24   : > { %s424_s20 = scalar_lea.vmem %s3342_s3, %s2457_s30  ;;  %s2532_s30 = sand.u32 1, %s2251_s14  }
  0x25   : > { %s413_s26 = scalar_lea.vmem %s3343_s1, %s1715_s11  ;;  %v718_v0 = vld [vmem:[%s424_s20] sm:$0x1]  ;;  %v719_v1 = vld [vmem:[%s424_s20 + $0x1] sm:$0x1]  ;;  %v720_v2 = vld [vmem:[%s424_s20 + $0x2] sm:$0x1] }
  0x26   : > { %v432_v3 = vld [vmem:[%s413_s26 + $0x10] sm:$0x1f]  ;;  %v721_v4 = vld [vmem:[%s424_s20 + $0x3] sm:$0x1]  ;;  %737 = vst [vmem:[#allocation1] ss:$9 sm:$0xff] %v718_v0 }
  0x27   : > { %v436_v5 = vmul.f32 %v432_v3, %v432_v3  ;;  %739 = vst [vmem:[#allocation1 + $0x1] ss:$9 sm:$0xff] %v719_v1  ;;  %v430_v6 = vld [vmem:[%s413_s26] sm:$0x1f]  ;;  %v2469_v8 = vld [vmem:[%s413_s26 + $0x18] sm:$0x1f]  ;;  %v523_v1 = vstv %s428_s12 }
  0x28   : > { %741 = vst [vmem:[#allocation1 + $0x2] ss:$9 sm:$0xff] %v720_v2  ;;  %v434_v7 = vmul.f32 %v430_v6, %v430_v6  ;;  %v2472_v10 = vld [vmem:[%s413_s26 + $0x8] sm:$0x1f]  ;;  %v437_v12 = vmul.f32 %v2469_v8, %v2469_v8  ;;  %s419_s21 = scalar_lea.vmem %s3344_s2, %s1715_s11  ;;  %s2335_s26 = smov 32  }
  0x29   : > { %v445_v9 = vsel %vm438_vm0, %v436_v5, 0.0  ;;  %743 = vst [vmem:[#allocation1 + $0x3] ss:$9 sm:$0xff] %v721_v4  ;;  %v435_v13 = vmul.f32 %v2472_v10, %v2472_v10  ;;  %v521_v2 = vld [vmem:[%s419_s21 + $0x10] sm:$0x1f]  ;;  %s1712_s0 = sshll.u32 %s2532_s30, 2 }
  0x2a   : > { %446 = vadd.xlane.f32.xlu1 %v445_v9  ;;  %v439_v11 = vsel %vm438_vm0, %v434_v7, 0.0  ;;  %v448_v14 = vsel %vm438_vm0, %v437_v12, 0.0  ;;  %v526_v4 = vmul.f32 %v523_v1, %v521_v2  ;;  %s2972_s28 = scalar_lea.vmem [#allocation5], %s1712_s0  ;;  %s3410_s12 = sshll.u32 %s2532_s30, 7 }
  0x2b   : > { %440 = vadd.xlane.f32.xlu0 %v439_v11  ;;  %v442_v15 = vsel %vm438_vm0, %v435_v13, 0.0  ;;  %v522_v11 = vld [vmem:[%s419_s21 + $0x18] sm:$0x1f]  ;;  %v520_v13 = vld [vmem:[%s419_s21 + $0x8] sm:$0x1f]  ;;  %s2980_s18 = scalar_lea.vmem [#allocation6], %s3410_s12 }
  0x2c   : > { %s3032_s20 = smov 0  }
  0x32   : > { %449 = vadd.xlane.f32.xlu1 %v448_v14 }
  0x33   : > { %443 = vadd.xlane.f32.xlu0 %v442_v15 }
  0x9d   : > { %v447_v16 = vpop.xlane.xlu1 %446 }
  0x9e   : > { %v453_v17 = vmax.f32 %v447_v16, 1e-24  ;;  %v441_v18 = vpop.xlane.xlu0 %440  ;;  %v527_v16 = vmul.f32 %v523_v1, %v522_v11 }
  0x9f   : > { %v451_v19 = vmax.f32 %v441_v18, 1e-24 }
  0xa0   : > { %2046 = vrsqrt.f32 %v453_v17  ;;  %vm481_vm1 = vweird.f32 %v453_v17 }
  0xa1   : > { %2048 = vrsqrt.f32 %v451_v19  ;;  %vm461_vm5 = vweird.f32 %v451_v19 }
  0xa5   : > { %v450_v20 = vpop.xlane.xlu1 %449 }
  0xa6   : > { %v2047_v21 = vpop.eup %2046  ;;  %v454_v22 = vmax.f32 %v450_v20, 1e-24  ;;  %v444_v23 = vpop.xlane.xlu0 %443 }
  0xa7   : > { %v2049_v24 = vpop.eup %2048  ;;  %v476_v25 = vmul.f32 %v2047_v21, %v453_v17  ;;  %v452_v26 = vmax.f32 %v444_v23, 1e-24  ;;  %vm482_vm2 = vweird.f32 %v2047_v21 }
  0xa8   : > { %v456_v27 = vmul.f32 %v2049_v24, %v451_v19  ;;  %2050 = vrsqrt.f32 %v454_v22  ;;  %vm462_vm3 = vweird.f32 %v2049_v24  ;;  %vm483_vm4 = vmor %vm481_vm1, %vm482_vm2  ;;  %vm491_vm7 = vweird.f32 %v454_v22 }
  0xa9   : > { %v477_v28 = vmul.f32 %v2047_v21, %v476_v25  ;;  %2052 = vrsqrt.f32 %v452_v26  ;;  %vm463_vm6 = vmor %vm461_vm5, %vm462_vm3  ;;  %vm471_vm11 = vweird.f32 %v452_v26  ;;  %v525_v19 = vmul.f32 %v523_v1, %v520_v13 }
  0xaa   : > { %v457_v29 = vmul.f32 %v2049_v24, %v456_v27 }
  0xab   : > { %v478_v30 = vmul.f32 0.5, %v477_v28 }
  0xac   : > { %v458_v31 = vmul.f32 0.5, %v457_v29 }
  0xad   : > { %v479_v32 = vsub.f32 1.5, %v478_v30 }
  0xae   : > { %v2051_v33 = vpop.eup %2050  ;;  %v459_v34 = vsub.f32 1.5, %v458_v31 }
  0xaf   : > { %v2053_v35 = vpop.eup %2052  ;;  %v486_v36 = vmul.f32 %v2051_v33, %v454_v22  ;;  %v480_v37 = vmul.f32 %v2047_v21, %v479_v32  ;;  %vm492_vm8 = vweird.f32 %v2051_v33 }
  0xb0   : > { %v466_v38 = vmul.f32 %v2053_v35, %v452_v26  ;;  %v460_v40 = vmul.f32 %v2049_v24, %v459_v34  ;;  %vm493_vm9 = vmor %vm491_vm7, %vm492_vm8  ;;  %vm472_vm10 = vweird.f32 %v2053_v35 }
  0xb1   : > { %v487_v41 = vmul.f32 %v2051_v33, %v486_v36  ;;  %v484_v42 = vsel %vm483_vm4, %v2047_v21, %v480_v37  ;;  %vm473_vm12 = vmor %vm471_vm11, %vm472_vm10 }
  0xb2   : > { %v467_v43 = vmul.f32 %v2053_v35, %v466_v38  ;;  %v2484_v44 = vmul.f32 %v484_v42, %v432_v3  ;;  %v464_v45 = vsel %vm463_vm6, %v2049_v24, %v460_v40  ;;  %v519_v3 = vld [vmem:[%s419_s21] sm:$0x1f] }
  0xb3   : > { %v488_v46 = vmul.f32 0.5, %v487_v41  ;;  %v2486_v47 = vmul.f32 %v464_v45, %v430_v6  ;;  %v524_v5 = vmul.f32 %v523_v1, %v519_v3  ;;  %v532_v6 = vstv %s1719_s25 }
  0xb4   : > { %v468_v48 = vmul.f32 0.5, %v467_v43  ;;  %v505_v49 = vmul.f32 %v2044_v39, %v2484_v44 }
  0xb5   : > { %v489_v50 = vsub.f32 1.5, %v488_v46  ;;  %v503_v51 = vmul.f32 %v2044_v39, %v2486_v47 }
  0xb6   : > { %v469_v52 = vsub.f32 1.5, %v468_v48  ;;  %v513_v53 = vsel %vm438_vm0, %v505_v49, 0.0 }
  0xb7   : > { %514 = vadd.xlane.f32.xlu0 %v513_v53  ;;  %v507_v54 = vsel %vm438_vm0, %v503_v51, 0.0  ;;  %v490_v55 = vmul.f32 %v2051_v33, %v489_v50  ;;  %v2334_v51 = vmov 0  }
  0xb8   : > { %508 = vadd.xlane.f32.xlu2 %v507_v54  ;;  %v470_v56 = vmul.f32 %v2053_v35, %v469_v52  ;;  %2043 = vset.pattern.permute.xlu1 %v2334_v51 }
  0xb9   : > { %v494_v57 = vsel %vm493_vm9, %v2051_v33, %v490_v55  ;;  %2041 = vset.pattern.permute.xlu2 %v2334_v51  ;;  %2042 = vset.pattern.permute.xlu0 %v2334_v51 }
  0xba   : > { %v2493_v58 = vmul.f32 %v494_v57, %v2469_v8  ;;  %v474_v59 = vsel %vm473_vm12, %v2053_v35, %v470_v56 }
  0xbb   : > { %v2496_v60 = vmul.f32 %v474_v59, %v2472_v10 }
  0xbc   : > { %v506_v61 = vmul.f32 %v2044_v39, %v2493_v58 }
  0xbd   : > { %v504_v62 = vmul.f32 %v2044_v39, %v2496_v60 }
  0xbe   : > { %v516_v63 = vsel %vm438_vm0, %v506_v61, 0.0 }
  0xbf   : > { %517 = vadd.xlane.f32.xlu1 %v516_v63  ;;  %v510_v0 = vsel %vm438_vm0, %v504_v62, 0.0 }
  0xc0   : > { %511 = vadd.xlane.f32.xlu2 %v510_v0 }
 0x12a   : > { %v515_v7 = vpop.xlane.xlu0 %514 }
 0x12b   : > { %v509_v8 = vpop.xlane.xlu2 %508  ;;  %v530_v9 = vadd.f32 %v526_v4, %v515_v7 }
 0x12c   : > { %v528_v10 = vadd.f32 %v524_v5, %v509_v8 }
 0x12d   : > { %v535_v12 = vadd.f32 %v532_v6, %v530_v9 }
 0x12e   : > { %v533_v14 = vadd.f32 %v532_v6, %v528_v10 }
 0x12f   : > { %v552_v15 = vsel %vm537_vm13, %v535_v12, -inf }
 0x130   : > { %v538_v17 = vsel %vm537_vm13, %v533_v14, -inf  ;;  %v553_v18 = vrot.slane %v552_v15, 4 }
 0x131   : > { %v539_v20 = vrot.slane %v538_v17, 4 }
 0x132   : > { %v554_v21 = vmax.f32 %v552_v15, %v553_v18  ;;  %v518_v22 = vpop.xlane.xlu1 %517 }
 0x133   : > { %v540_v23 = vmax.f32 %v538_v17, %v539_v20  ;;  %v531_v24 = vadd.f32 %v527_v16, %v518_v22  ;;  %v512_v25 = vpop.xlane.xlu2 %511 }
 0x134   : > { %v555_v26 = vrot.slane %v554_v21, 2  ;;  %v529_v27 = vadd.f32 %v525_v19, %v512_v25 }
 0x135   : > { %v541_v28 = vrot.slane %v540_v23, 2  ;;  %v536_v29 = vadd.f32 %v532_v6, %v531_v24 }
 0x136   : > { %v556_v30 = vmax.f32 %v554_v21, %v555_v26  ;;  %v534_v31 = vadd.f32 %v532_v6, %v529_v27 }
 0x137   : > { %v542_v32 = vmax.f32 %v540_v23, %v541_v28  ;;  %v559_v33 = vsel %vm537_vm13, %v536_v29, -inf }
 0x138   : > { %v557_v34 = vrot.slane %v556_v30, 1  ;;  %v560_v35 = vrot.slane %v559_v33, 4  ;;  %v545_v36 = vsel %vm537_vm13, %v534_v31, -inf }
 0x139   : > { %v543_v37 = vrot.slane %v542_v32, 1  ;;  %v546_v38 = vrot.slane %v545_v36, 4 }
 0x13a   : > { %v558_v39 = vmax.f32 %v556_v30, %v557_v34  ;;  %v561_v40 = vmax.f32 %v559_v33, %v560_v35 }
 0x13b   : > { %v544_v41 = vmax.f32 %v542_v32, %v543_v37  ;;  %v547_v42 = vmax.f32 %v545_v36, %v546_v38 }
 0x13c   : > { %v568_v43 = vsub.f32 %v535_v12, %v558_v39  ;;  %v562_v45 = vrot.slane %v561_v40, 2 }
 0x13d   : > { %v566_v46 = vsub.f32 %v533_v14, %v544_v41  ;;  %v548_v48 = vrot.slane %v547_v42, 2 }
 0x13e   : > { %v574_v49 = vmul.f32 1.442695, %v568_v43  ;;  %v563_v50 = vmax.f32 %v561_v40, %v562_v45 }
 0x13f   : > { %v570_v52 = vmul.f32 1.442695, %v566_v46  ;;  %v549_v53 = vmax.f32 %v547_v42, %v548_v48 }
 0x140   : > { %2054 = vpow2.f32 %v574_v49  ;;  %v564_v54 = vrot.slane %v563_v50, 1 }
 0x141   : > { %2056 = vpow2.f32 %v570_v52  ;;  %v550_v55 = vrot.slane %v549_v53, 1 }
 0x142   : > { %v565_v56 = vmax.f32 %v563_v50, %v564_v54 }
 0x143   : > { %v551_v57 = vmax.f32 %v549_v53, %v550_v55 }
 0x144   : > { %v569_v59 = vsub.f32 %v536_v29, %v565_v56 }
 0x145   : > { %v567_v61 = vsub.f32 %v534_v31, %v551_v57 }
 0x146   : > { %v2511_v62 = vpop.eup %2054  ;;  %v576_v63 = vmul.f32 1.442695, %v569_v59 }
 0x147   : > { %v2513_v0 = vpop.eup %2056  ;;  %v592_v1 = vsel %vm537_vm13, %v2511_v62, 0.0  ;;  %v572_v2 = vmul.f32 1.442695, %v567_v61 }
 0x148   : > { %v578_v3 = vsel %vm537_vm13, %v2513_v0, 0.0  ;;  %v593_v4 = vrot.slane %v592_v1, 4  ;;  %2058 = vpow2.f32 %v576_v63 }
 0x149   : > { %v579_v5 = vrot.slane %v578_v3, 4  ;;  %2060 = vpow2.f32 %v572_v2 }
 0x14a   : > { %v594_v6 = vadd.f32 %v593_v4, %v592_v1 }
 0x14b   : > { %v580_v7 = vadd.f32 %v579_v5, %v578_v3 }
 0x14c   : > { %v595_v8 = vrot.slane %v594_v6, 2 }
 0x14d   : > { %v581_v9 = vrot.slane %v580_v7, 2 }
 0x14e   : > { %v2519_v10 = vpop.eup %2058  ;;  %v596_v11 = vadd.f32 %v595_v8, %v594_v6 }
 0x14f   : > { %v2521_v12 = vpop.eup %2060  ;;  %v582_v13 = vadd.f32 %v581_v9, %v580_v7  ;;  %v599_v14 = vsel %vm537_vm13, %v2519_v10, 0.0 }
 0x150   : > { %v597_v15 = vrot.slane %v596_v11, 1  ;;  %v600_v16 = vrot.slane %v599_v14, 4  ;;  %v585_v17 = vsel %vm537_vm13, %v2521_v12, 0.0 }
 0x151   : > { %v583_v18 = vrot.slane %v582_v13, 1  ;;  %v586_v19 = vrot.slane %v585_v17, 4 }
 0x152   : > { %v598_v20 = vadd.f32 %v597_v15, %v596_v11  ;;  %v601_v21 = vadd.f32 %v600_v16, %v599_v14 }
 0x153   : > { %v584_v22 = vadd.f32 %v583_v18, %v582_v13  ;;  %v587_v23 = vadd.f32 %v586_v19, %v585_v17  ;;  %v744_v18 = vld [vmem:[#allocation1] sm:$0xff] }
 0x154   : > { %2062 = vrcp.f32 %v598_v20  ;;  %v602_v24 = vrot.slane %v601_v21, 2  ;;  %v645_v38 = vand.u32 2147483648, %v598_v20  ;;  %v643_v41 = vand.u32 2147483647, %v598_v20 }
 0x155   : > { %2064 = vrcp.f32 %v584_v22  ;;  %v588_v25 = vrot.slane %v587_v23, 2  ;;  %v617_v39 = vand.u32 2147483648, %v584_v22  ;;  %v615_v43 = vand.u32 2147483647, %v584_v22 }
 0x156   : > { %v603_v26 = vadd.f32 %v602_v24, %v601_v21  ;;  %vm639_vm1 = vweird.f32 %v598_v20  ;;  %vm611_vm2 = vweird.f32 %v584_v22  ;;  %v646_v49 = vor.u32 1.1754944e-38, %v645_v38  ;;  %v751_v21 = vld [vmem:[%s3328_s5 + $0x8] sm:$0xff] }
 0x157   : > { %v589_v27 = vadd.f32 %v588_v25, %v587_v23  ;;  %v618_v51 = vor.u32 1.1754944e-38, %v617_v39  ;;  %vm644_vm5 = vcmp.eq.f32.partialorder %v643_v41, 8.507059e+37  ;;  %vm616_vm6 = vcmp.eq.f32.partialorder %v615_v43, 8.507059e+37 }
 0x158   : > { %v604_v28 = vrot.slane %v603_v26, 1 }
 0x159   : > { %v590_v29 = vrot.slane %v589_v27, 1 }
 0x15a   : > { %v2063_v30 = vpop.eup %2062  ;;  %v605_v31 = vadd.f32 %v604_v28, %v603_v26 }
 0x15b   : > { %v2065_v32 = vpop.eup %2064  ;;  %v591_v33 = vadd.f32 %v590_v29, %v589_v27  ;;  %v635_v34 = vmul.f32 %v2063_v30, %v598_v20  ;;  %vm640_vm14 = vweird.f32 %v2063_v30  ;;  %v754_v20 = vld [vmem:[%s3328_s5 + $0x20] sm:$0xff] }
 0x15c   : > { %2066 = vrcp.f32 %v605_v31  ;;  %v607_v35 = vmul.f32 %v2065_v32, %v584_v22  ;;  %vm612_vm15 = vweird.f32 %v2065_v32  ;;  %vm641_vm3 = vmor %vm639_vm1, %vm640_vm14  ;;  %v659_v1 = vand.u32 2147483648, %v605_v31  ;;  %774 = vmatpush.msra.mxu0 %v754_v20  ;;  %v750_v22 = vld [vmem:[%s3328_s5] sm:$0xff] }
 0x15d   : > { %2068 = vrcp.f32 %v591_v33  ;;  %v636_v36 = vsub.f32 1.0, %v635_v34  ;;  %vm613_vm4 = vmor %vm611_vm2, %vm612_vm15  ;;  %v657_v4 = vand.u32 2147483647, %v605_v31  ;;  %v631_v5 = vand.u32 2147483648, %v591_v33 }
 0x15e   : > { %v608_v37 = vsub.f32 1.0, %v607_v35  ;;  %v629_v7 = vand.u32 2147483647, %v591_v33  ;;  %vm653_vm9 = vweird.f32 %v605_v31  ;;  %v660_v9 = vor.u32 1.1754944e-38, %v659_v1 }
 0x15f   : > { %v637_v40 = vmul.f32 %v2063_v30, %v636_v36  ;;  %vm625_vm11 = vweird.f32 %v591_v33  ;;  %vm658_vm12 = vcmp.eq.f32.partialorder %v657_v4, 8.507059e+37  ;;  %vm726_vm15 = vcmask 1041409  }
 0x160   : > { %v609_v42 = vmul.f32 %v2065_v32, %v608_v37  ;;  %vm630_vm14 = vcmp.eq.f32.partialorder %v629_v7, 8.507059e+37  ;;  %vm728_vm1 = vcmask 1042434   ;;  %vm730_vm2 = vcmask 1043459  }
 0x161   : > { %v638_v45 = vadd.f32 %v2063_v30, %v637_v40  ;;  %v794_v1 = vlaneseq }
 0x162   : > { %v2067_v46 = vpop.eup %2066  ;;  %v610_v48 = vadd.f32 %v2065_v32, %v609_v42 }
 0x163   : > { %v2069_v50 = vpop.eup %2068  ;;  %v642_v52 = vsel %vm641_vm3, %v2063_v30, %v638_v45  ;;  %v649_v53 = vmul.f32 %v2067_v46, %v605_v31  ;;  %vm654_vm7 = vweird.f32 %v2067_v46  ;;  %vm759_vm3 = vcmask 326656  }
 0x164   : > { %v614_v54 = vsel %vm613_vm4, %v2065_v32, %v610_v48  ;;  %v647_v55 = vsel %vm644_vm5, %v646_v49, %v642_v52  ;;  %v621_v56 = vmul.f32 %v2069_v50, %v591_v33  ;;  %vm626_vm8 = vweird.f32 %v2069_v50  ;;  %vm655_vm10 = vmor %vm653_vm9, %vm654_vm7 }
 0x165   : > { %v619_v57 = vsel %vm616_vm6, %v618_v51, %v614_v54  ;;  %v664_v59 = vmul.f32 %v2511_v62, %v647_v55  ;;  %v650_v61 = vsub.f32 1.0, %v649_v53  ;;  %vm627_vm13 = vmor %vm625_vm11, %vm626_vm8 }
 0x166   : > { %v662_v63 = vmul.f32 %v2513_v0, %v619_v57  ;;  %v622_v2 = vsub.f32 1.0, %v621_v56  ;;  %v632_v0 = vor.u32 1.1754944e-38, %v631_v5 }
 0x167   : > { %678 = vperm.xlu1 %2043, %v664_v59   ;;  %v651_v3 = vmul.f32 %v2067_v46, %v650_v61 }
 0x168   : > { %668 = vperm.xlu2 %2041, %v662_v63   ;;  %v623_v6 = vmul.f32 %v2069_v50, %v622_v2  ;;  %v2559_v2 = vshrl.u32 %v794_v1, 7 }
 0x169   : > { %v652_v8 = vadd.f32 %v2067_v46, %v651_v3 }
 0x16a   : > { %v624_v62 = vadd.f32 %v2069_v50, %v623_v6  ;;  %v2562_v3 = vadd.s32 8, %v2559_v2  ;;  %v2565_v4 = vadd.s32 16, %v2559_v2  ;;  %v2568_v5 = vadd.s32 24, %v2559_v2 }
 0x16b   : > { %v656_v11 = vsel %vm655_vm10, %v2067_v46, %v652_v8  ;;  %v2571_v6 = vadd.s32 32, %v2559_v2  ;;  %v2574_v7 = vadd.s32 40, %v2559_v2  ;;  %v2577_v8 = vadd.s32 48, %v2559_v2 }
 0x16c   : > { %v661_v13 = vsel %vm658_vm12, %v660_v9, %v656_v11  ;;  %v628_v14 = vsel %vm627_vm13, %v2069_v50, %v624_v62  ;;  %v2580_v9 = vadd.s32 56, %v2559_v2  ;;  %v2583_v62 = vadd.s32 64, %v2559_v2 }
 0x16d   : > { %v665_v15 = vmul.f32 %v2519_v10, %v661_v13  ;;  %v633_v16 = vsel %vm630_vm14, %v632_v0, %v628_v14  ;;  %v753_v10 = vld [vmem:[%s3328_s5 + $0x18] sm:$0xff]  ;;  %v2586_v11 = vadd.s32 72, %v2559_v2  ;;  %v2589_v0 = vadd.s32 80, %v2559_v2 }
 0x16e   : > { %v663_v17 = vmul.f32 %v2521_v12, %v633_v16  ;;  %775 = vmatpush.msra.mxu0 %v753_v10  ;;  %v752_v12 = vld [vmem:[%s3328_s5 + $0x10] sm:$0xff]  ;;  %v2592_v13 = vadd.s32 88, %v2559_v2  ;;  %v2595_v14 = vadd.s32 96, %v2559_v2  ;;  %v2601_v16 = vadd.s32 112, %v2559_v2 }
 0x16f   : > { %v814_v20 = vand.u32 31, %v2562_v3  ;;  %v815_v10 = vand.u32 31, %v2565_v4 }
 0x170   : > { %683 = vperm.xlu2 %2041, %v665_v15   ;;  %673 = vperm.xlu0 %2042, %v663_v17   ;;  %v2598_v15 = vadd.s32 104, %v2559_v2  ;;  %v2604_v17 = vadd.s32 120, %v2559_v2 }
 0x171   : > { %776 = vmatpush.msra.mxu0 %v752_v12  ;;  %v816_v12 = vand.u32 31, %v2568_v5 }
 0x173   : > { %777 = vmatpush.msra.mxu0 %v751_v21  ;;  %v817_v21 = vand.u32 31, %v2571_v6 }
 0x175   : > { %778 = vmatpush.msra.mxu0 %v750_v22  ;;  %v818_v22 = vand.u32 31, %v2574_v7 }
 0x178   : > { %745 = vrot.lane.b32.xlu2 %v744_v18, %s2335_s26  ;;  %v2606_v18 = vand.u32 127, %v794_v1 }
 0x17a   : > { %vm2630_vm5 = vcmp.eq.s32.totalorder %v814_v20, %v2606_v18  ;;  %vm2635_vm6 = vcmp.eq.s32.totalorder %v815_v10, %v2606_v18  ;;  %vm2640_vm7 = vcmp.eq.s32.totalorder %v816_v12, %v2606_v18  ;;  %vm2645_vm8 = vcmp.eq.s32.totalorder %v817_v21, %v2606_v18 }
 0x17b   : > { %vm2650_vm9 = vcmp.eq.s32.totalorder %v818_v22, %v2606_v18  ;;  %v883_v12 = vshra.s32 %v2565_v4, 5  ;;  %v884_v21 = vshra.s32 %v2568_v5, 5  ;;  %v885_v22 = vshra.s32 %v2571_v6, 5 }
 0x17c   : > { %v893_v4 = vshra.s32 %v2595_v14, 5  ;;  %v894_v5 = vshra.s32 %v2598_v15, 5  ;;  %v895_v6 = vshra.s32 %v2601_v16, 5 }
 0x1c2   : > { %v669_v19 = vpop.permute.xlu2 %668 }
 0x1c3   : > { %v686_v24 = vmul.f32 %v669_v19, %v2486_v47  ;;  %v813_v19 = vand.u32 31, %v2559_v2 }
 0x1c5   : > { %v690_v26 = vsel %vm438_vm0, %v686_v24, 0.0  ;;  %v820_v24 = vand.u32 31, %v2580_v9  ;;  %vm2625_vm4 = vcmp.eq.s32.totalorder %v813_v19, %v2606_v18 }
 0x1c6   : > { %v691_v30 = vrot.slane %v690_v26, 4 }
 0x1c7   : > { %vm2660_vm11 = vcmp.eq.s32.totalorder %v820_v24, %v2606_v18  ;;  %v887_v24 = vshra.s32 %v2577_v8, 5 }
 0x1c8   : > { %v692_v34 = vadd.f32 %v691_v30, %v690_v26  ;;  %v822_v26 = vand.u32 31, %v2586_v11  ;;  %v826_v30 = vand.u32 31, %v2598_v15 }
 0x1ca   : > { %v684_v23 = vpop.permute.xlu2 %683  ;;  %v693_v38 = vrot.slane %v692_v34, 2  ;;  %vm2670_vm13 = vcmp.eq.s32.totalorder %v822_v26, %v2606_v18  ;;  %v889_v26 = vshra.s32 %v2583_v62, 5 }
 0x1cb   : > { %v689_v25 = vmul.f32 %v684_v23, %v2493_v58  ;;  %v819_v23 = vand.u32 31, %v2577_v8 }
 0x1cd   : > { %v711_v29 = vsel %vm438_vm0, %v689_v25, 0.0  ;;  %v821_v25 = vand.u32 31, %v2583_v62  ;;  %vm2655_vm10 = vcmp.eq.s32.totalorder %v819_v23, %v2606_v18  ;;  %v886_v23 = vshra.s32 %v2574_v7, 5 }
 0x1ce   : > { %v712_v33 = vrot.slane %v711_v29, 4  ;;  %v896_v7 = vshra.s32 %v2604_v17, 5 }
 0x1cf   : > { %vm2665_vm12 = vcmp.eq.s32.totalorder %v821_v25, %v2606_v18  ;;  %v888_v25 = vshra.s32 %v2580_v9, 5 }
 0x1d0   : > { %v713_v36 = vadd.f32 %v712_v33, %v711_v29  ;;  %v825_v29 = vand.u32 31, %v2595_v14 }
 0x1d2   : > { %v714_v40 = vrot.slane %v713_v36, 2  ;;  %v746_v56 = vpop.permute.xlu2 %745 }
 0x1d4   : > { %v715_v45 = vadd.f32 %v714_v40, %v713_v36 }
 0x1d6   : > { %v716_v51 = vrot.slane %v715_v45, 1 }
 0x1d8   : > { %v717_v55 = vadd.f32 %v716_v51, %v715_v45 }
 0x1d9   : > { %v679_v27 = vpop.permute.xlu1 %678 }
 0x1da   : > { %v688_v28 = vmul.f32 %v679_v27, %v2484_v44  ;;  %v694_v44 = vadd.f32 %v693_v38, %v692_v34  ;;  %v823_v27 = vand.u32 31, %v2589_v0 }
 0x1dc   : > { %v704_v31 = vsel %vm438_vm0, %v688_v28, 0.0  ;;  %v695_v48 = vrot.slane %v694_v44, 1  ;;  %v824_v28 = vand.u32 31, %v2592_v13  ;;  %vm2675_vm14 = vcmp.eq.s32.totalorder %v823_v27, %v2606_v18 }
 0x1dd   : > { %v705_v32 = vrot.slane %v704_v31, 4  ;;  %v890_v27 = vshra.s32 %v2586_v11, 5 }
 0x1de   : > { %v696_v53 = vadd.f32 %v695_v48, %v694_v44  ;;  %v881_v48 = vshra.s32 %v2559_v2, 5 }
 0x1df   : > { %v706_v35 = vadd.f32 %v705_v32, %v704_v31  ;;  %v827_v31 = vand.u32 31, %v2601_v16  ;;  %v828_v32 = vand.u32 31, %v2604_v17 }
 0x1e1   : > { %v707_v58 = vrot.slane %v706_v35, 2 }
 0x1e2   : > { %v674_v37 = vpop.permute.xlu0 %673 }
 0x1e3   : > { %v687_v47 = vmul.f32 %v674_v37, %v2496_v60  ;;  %v708_v43 = vadd.f32 %v707_v58, %v706_v35 }
 0x1e5   : > { %v697_v39 = vsel %vm438_vm0, %v687_v47, 0.0  ;;  %v709_v50 = vrot.slane %v708_v43, 1  ;;  %vm3334_vm0 = vcmask 261120  }
 0x1e6   : > { %v698_v41 = vrot.slane %v697_v39, 4 }
 0x1e7   : > { %v710_v60 = vadd.f32 %v709_v50, %v708_v43  ;;  %v2336_v50 = vmov 0.0  }
 0x1e8   : > { %v699_v42 = vadd.f32 %v698_v41, %v697_v39  ;;  %v2709_v51 = vsel %vm2625_vm4, 1.0, %v2336_v50  }
 0x1ea   : > { %v700_v46 = vrot.slane %v699_v42, 2 }
 0x1ec   : > { %v701_v49 = vadd.f32 %v700_v46, %v699_v42  ;;  %v2045_v42 = vld [vmem:[%s3329_s6] ss:$0 sm:$0xff] }
 0x1ee   : > { %v702_v52 = vrot.slane %v701_v49, 1 }
 0x1f0   : > { %v703_v54 = vadd.f32 %v702_v52, %v701_v49  ;;  %v882_v49 = vshra.s32 %v2562_v3, 5  ;;  %v2714_v52 = vsel %vm2630_vm5, 1.0, %v2336_v50   ;;  %vm2811_vm5 = vcmp.eq.s32.totalorder %v883_v12, %v2606_v18 }
 0x1f1   : > { %v2895_v47 = vsel %vm2811_vm5, 1.0, %v2336_v50  ;;  %vm861_vm5 = vcmask 1043456  }
 0x1f2   : > { %v727_v57 = vsel %vm726_vm15, %v703_v54, %v696_v53  ;;  %vm2680_vm15 = vcmp.eq.s32.totalorder %v824_v28, %v2606_v18  ;;  %v2719_v53 = vsel %vm2635_vm6, 1.0, %v2336_v50   ;;  %v2724_v54 = vsel %vm2640_vm7, 1.0, %v2336_v50  }
 0x1f3   : > { %v729_v59 = vsel %vm728_vm1, %v710_v60, %v727_v57  ;;  %vm2685_vm1 = vcmp.eq.s32.totalorder %v825_v29, %v2606_v18  ;;  %v2729_v60 = vsel %vm2645_vm8, 1.0, %v2336_v50   ;;  %v2744_v57 = vsel %vm2660_vm11, 1.0, %v2336_v50  }
 0x1f4   : > { %v731_v61 = vsel %vm730_vm2, %v717_v55, %v729_v59  ;;  %vm2690_vm2 = vcmp.eq.s32.totalorder %v826_v30, %v2606_v18  ;;  %v2734_v55 = vsel %vm2650_vm9, 1.0, %v2336_v50   ;;  %v2749_v59 = vsel %vm2665_vm12, 1.0, %v2336_v50  }
 0x1f5   : > { %v749_v63 = vsel %vm3334_vm0, %v731_v61, %v746_v56  ;;  %vm2700_vm0 = vcmp.eq.s32.totalorder %v828_v32, %v2606_v18  ;;  %v2739_v56 = vsel %vm2655_vm10, 1.0, %v2336_v50   ;;  %v2754_v61 = vsel %vm2670_vm13, 1.0, %v2336_v50  }
 0x1f6   : > { %1720 = vmatmul.msk.f32.vlgmr.msra.gmra.mxu0 %vm759_vm3, %v749_v63  ;;  %vm2695_vm3 = vcmp.eq.s32.totalorder %v827_v31, %v2606_v18  ;;  %v2759_v63 = vsel %vm2675_vm14, 1.0, %v2336_v50   ;;  %v2764_v1 = vsel %vm2680_vm15, 1.0, %v2336_v50   ;;  %v2769_v3 = vsel %vm2685_vm1, 1.0, %v2336_v50  }
 0x1f7   : > { %v2774_v19 = vsel %vm2690_vm2, 1.0, %v2336_v50   ;;  %v2779_v20 = vsel %vm2695_vm3, 1.0, %v2336_v50   ;;  %v2784_v10 = vsel %vm2700_vm0, 1.0, %v2336_v50   ;;  %v891_v28 = vshra.s32 %v2589_v0, 5 }
 0x1f8   : > { %v892_v29 = vshra.s32 %v2592_v13, 5  ;;  %vm2801_vm0 = vcmp.eq.s32.totalorder %v881_v48, %v2606_v18  ;;  %vm2806_vm4 = vcmp.eq.s32.totalorder %v882_v49, %v2606_v18  ;;  %vm2816_vm6 = vcmp.eq.s32.totalorder %v884_v21, %v2606_v18 }
 0x1f9   : > { %vm2821_vm7 = vcmp.eq.s32.totalorder %v885_v22, %v2606_v18  ;;  %vm2826_vm8 = vcmp.eq.s32.totalorder %v886_v23, %v2606_v18  ;;  %vm2831_vm9 = vcmp.eq.s32.totalorder %v887_v24, %v2606_v18  ;;  %vm2836_vm10 = vcmp.eq.s32.totalorder %v888_v25, %v2606_v18 }
 0x1fa   : > { %vm2841_vm11 = vcmp.eq.s32.totalorder %v889_v26, %v2606_v18  ;;  %vm2846_vm12 = vcmp.eq.s32.totalorder %v890_v27, %v2606_v18  ;;  %vm2851_vm13 = vcmp.eq.s32.totalorder %v891_v28, %v2606_v18  ;;  %vm2856_vm14 = vcmp.eq.s32.totalorder %v892_v29, %v2606_v18 }
 0x1fb   : > { %v3399_v31 = vmov 0  ;;  %vm2861_vm15 = vcmp.eq.s32.totalorder %v893_v4, %v2606_v18  ;;  %vm2866_vm1 = vcmp.eq.s32.totalorder %v894_v5, %v2606_v18  ;;  %vm2871_vm2 = vcmp.eq.s32.totalorder %v895_v6, %v2606_v18 }
 0x1fc   : > { %v3400_v31 = vsel %vm2856_vm14, 4294967295, %v3399_v31  ;;  %vm2876_vm3 = vcmp.eq.s32.totalorder %v896_v7, %v2606_v18  ;;  %vm947_vm14 = vcmp.eq.s32.totalorder %v2559_v2, %v2606_v18  ;;  %v2885_v36 = vsel %vm2801_vm0, 1.0, %v2336_v50 }
 0x1fd   : > { %v2890_v37 = vsel %vm2806_vm4, 1.0, %v2336_v50  ;;  %v2900_v38 = vsel %vm2816_vm6, 1.0, %v2336_v50  ;;  %v2905_v58 = vsel %vm2821_vm7, 1.0, %v2336_v50  ;;  %v2911_v39 = vsel %vm2826_vm8, 1.0, %v2336_v50 }
 0x1fe   : > { %v2916_v40 = vsel %vm2831_vm9, 1.0, %v2336_v50  ;;  %v2921_v41 = vsel %vm2836_vm10, 1.0, %v2336_v50  ;;  %v2926_v44 = vsel %vm2841_vm11, 1.0, %v2336_v50  ;;  %v2934_v43 = vsel %vm2846_vm12, 1.0, %v2336_v50 }
 0x1ff   : > { %v2939_v45 = vsel %vm2851_vm13, 1.0, %v2336_v50  ;;  %vm3409_vm0 = vnez %v3400_v31  ;;  %v2949_v48 = vsel %vm2861_vm15, 1.0, %v2336_v50  ;;  %v2954_v49 = vsel %vm2866_vm1, 1.0, %v2336_v50 }
 0x200   : > { %v2944_v46 = vsel %vm3409_vm0, 1.0, %v2336_v50  ;;  %v2959_v12 = vsel %vm2871_vm2, 1.0, %v2336_v50  ;;  %v2964_v21 = vsel %vm2876_vm3, 1.0, %v2336_v50  ;;  %v2970_v22 = vsel %vm947_vm14, 1.0, %v2336_v50 }
 0x201   : > { %vm783_vm4 = vcmask 253952   ;;  %vm786_vm6 = vcmask 254977   ;;  %vm789_vm7 = vcmask 256002   ;;  %vm792_vm8 = vcmask 257027  }
 0x273   : > { %v780_v23 = vpop.f32.mrf.mxu0 }
 0x274   : > { %v781_v24 = vadd.f32 %v2045_v42, %v780_v23 }
 0x276   : > { %784 = vst.msk [vmem:[%s2972_s28] sm:$0x1] %vm783_vm4, %v781_v24  ;;  %v862_v25 = vsel %vm861_vm5, %v781_v24, 0.0  }
 0x277   : > { %1721 = vst.msk [vmem:[%s2972_s28] sm:$0x2] %vm786_vm6, %v781_v24 }
 0x278   : > { %1722 = vst.msk [vmem:[%s2972_s28] sm:$0x4] %vm789_vm7, %v781_v24 }
 0x279   : > { %1723 = vst.msk [vmem:[%s2972_s28] sm:$0x8] %vm792_vm8, %v781_v24 }
 0x27a LB: >> { %s1740_s21 = sshll.u32 %s2331_s20, 5  ;;  %vm3411_vm9 = vcmask 261120   ;;  %s2337_s11 = smov 16   ;;  %s2331_s20 = sphi %s3032_s20, %s970_s20   ;;  %v2327_v51 = vphi %v2709_v51, %v3444_v51   ;;  %v2323_v52 = vphi %v2714_v52, %v3443_v52   ;;  %v2319_v53 = vphi %v2719_v53, %v3442_v53   ;;  %v2315_v54 = vphi %v2724_v54, %v3441_v54   ;;  %v2311_v60 = vphi %v2729_v60, %v3440_v60   ;;  %v2307_v55 = vphi %v2734_v55, %v3439_v55   ;;  %v2303_v56 = vphi %v2739_v56, %v3438_v56   ;;  %v2299_v57 = vphi %v2744_v57, %v3437_v57   ;;  %v2295_v59 = vphi %v2749_v59, %v3436_v59   ;;  %v2291_v61 = vphi %v2754_v61, %v3435_v61   ;;  %v2287_v63 = vphi %v2759_v63, %v3434_v63   ;;  %v2283_v1 = vphi %v2764_v1, %v3433_v1   ;;  %v2279_v3 = vphi %v2769_v3, %v3432_v3   ;;  %v2275_v19 = vphi %v2774_v19, %v3431_v19   ;;  %v2271_v20 = vphi %v2779_v20, %v3430_v20   ;;  %v2267_v10 = vphi %v2784_v10, %v3429_v10   ;;  %v2263_v25 = vphi %v862_v25, %v1458_v25  }
 0x27b   : >> { %s989_s0 = scalar_lea.vmem %s3330_s7, %s1740_s21  ;;  %vm3412_vm10 = vmmov %vm3411_vm9  ;;  %s2339_s27 = smov 112  }
 0x27c   : >> { %v993_v2 = vld [vmem:[%s989_s0 + $0x18] sm:$0xff]  ;;  %v992_v18 = vld [vmem:[%s989_s0 + $0x10] sm:$0xff]  ;;  %v991_v50 = vld [vmem:[%s989_s0 + $0x8] sm:$0xff]  ;;  %s2340_s12 = smov 32   ;;  %s1741_s21 = sshll.u32 %s2331_s20, 6 }
 0x27d   : >> { %1818 = vmatpush.msra.mxu3 %v993_v2  ;;  %1067 = vmatpush.msra.mxu0 %v993_v2  ;;  %v990_v26 = vld [vmem:[%s989_s0] sm:$0xff]  ;;  %vm3413_vm11 = vmmov %vm3411_vm9  ;;  %s995_s0 = scalar_lea.vmem %s3331_s8, %s1741_s21  ;;  %s970_s20 = sadd.s32 1, %s2331_s20  }
 0x27e   : >> { %vm3414_vm12 = vmmov %vm3411_vm9  ;;  %p3187_p0 = scmp.ge.s32.totalorder %s970_s20, 15  }
 0x27f   : >> { %1819 = vmatpush.msra.mxu3 %v992_v18  ;;  %1068 = vmatpush.msra.mxu0 %v992_v18  ;;  %s1817_s20 = sshll.u32 (%p3187_p0), %s2421_s17, 7  ;;  %s1496_s21 = scalar_lea.hbm (%p3187_p0), %s3332_s9, %s2453_s29 }
 0x280   : > { %s1497_s25 = sshll.u32 (%p3187_p0), %s2972_s28, 4  ;;  %s3256_s17 = sshll.u32 (%p3187_p0), %s1496_s21, 4  ;;  %s3260_s25 = int_to_ptr.vmem [resolvable:$true] %s1497_s25  ;;  %s1500_s17 = int_to_ptr.hbm [resolvable:$true] %s3256_s17 }
 0x281   : >> { %1820 = vmatpush.msra.mxu3 %v991_v50  ;;  %1069 = vmatpush.msra.mxu0 %v991_v50  ;;  %s1515_s29 = sshll.u32 (%p3187_p0), %s2980_s18, 4  ;;  %s3272_s29 = int_to_ptr.vmem [resolvable:$true] %s1515_s29 }
 0x283   : >> { %1821 = vmatpush.msra.mxu3 %v990_v26  ;;  %1070 = vmatpush.msra.mxu0 %v990_v26 }
 0x284   : >> { %1755 = vmatmul.msk.f32.vlgmr.msra.gmra.mxu3 %vm3411_vm9, %v2275_v19  ;;  %1742 = vmatmul.msk.f32.vlgmr.msra.gmra.mxu0 %vm3411_vm9, %v2327_v51  ;;  %v1003_v51 = vld [vmem:[%s995_s0 + $0x38] sm:$0xff] }
 0x285   : >> { %1401 = vmatpush.msra.mxu2 %v1003_v51 }
 0x28c   : >> { %1756 = vmatmul.msk.f32.gmra.mxu3 %vm3412_vm10, %v2271_v20  ;;  %vm3415_vm10 = vmmov %vm3411_vm9 }
 0x28d   : >> { %1743 = vmatmul.msk.f32.gmra.mxu0 %vm3415_vm10, %v2323_v52  ;;  %v1002_v52 = vld [vmem:[%s995_s0 + $0x30] sm:$0xff]  ;;  %vm1341_vm10 = vcmask 523264  }
 0x28e   : >> { %1402 = vmatpush.msra.mxu2 %v1002_v52 }
 0x294   : >> { %1757 = vmatmul.msk.f32.gmra.mxu3 %vm3413_vm11, %v2267_v10  ;;  %vm3416_vm11 = vmmov %vm3411_vm9 }
 0x295   : >> { %1744 = vmatmul.msk.f32.gmra.mxu0 %vm3416_vm11, %v2319_v53  ;;  %v1001_v53 = vld [vmem:[%s995_s0 + $0x28] sm:$0xff]  ;;  %vm3445_vm11 = vcmask (%p3187_p0), 261120  }
 0x296   : >> { %1403 = vmatpush.msra.mxu2 %v1001_v53 }
 0x29c   : >> { %1758 = vmatmul.msk.f32.gmra.mxu3 %vm3414_vm12, %v2263_v25  ;;  %vm1199_vm12 = vcmask 130048  }
 0x307   : >> { %v3088_v27 = vpop.f32.mrf.mxu3 }
 0x30f   : >> { %v3090_v28 = vpop.f32.mrf.mxu3 }
 0x317   : >> { %v3092_v29 = vpop.f32.mrf.mxu3 }
 0x31f   : >> { %v3094_v4 = vpop.f32.mrf.mxu3 }
 0x320   : >> { %1124 = vrot.lane.b32.xlu0 %v3094_v4, %s2337_s11 }
 0x392   : >> { %v1125_v5 = vpop.permute.xlu0 %1124 }
 0x393   : >> { %v1127_v19 = vsub.f32 %v3094_v4, %v1125_v5 }
 0x395   : >> { %v1128_v20 = vmul.f32 64.0, %v1127_v19 }
 0x397   : >> { %v1129_v6 = vand.u32 2147483647, %v1128_v20  ;;  %vm1131_vm7 = vcmp.lt.f32.partialorder %v1128_v20, 0.0  ;;  %vm1130_vm8 = vcmp.gt.f32.partialorder %v1128_v20, 0.0 }
 0x399   : >> { %v1136_v10 = vmax.f32 %v1129_v6, 1e-20  ;;  %v1153_v7 = vadd.f32 1.0, %v1129_v6  ;;  %v1759_v24 = vadd.f32 -1.0, %v1129_v6  ;;  %vm1135_vm5 = vcmp.gt.f32.partialorder %v1129_v6, 0.41421357 }
 0x39a   : >> { %vm1134_vm6 = vcmp.gt.f32.partialorder %v1129_v6, 2.4142137 }
 0x39b   : >> { %2070 = vrcp.f32 %v1136_v10  ;;  %v1148_v13 = vand.u32 2147483648, %v1136_v10  ;;  %v1146_v16 = vand.u32 2147483647, %v1136_v10  ;;  %v1165_v17 = vand.u32 2147483648, %v1153_v7 }
 0x39c   : >> { %2072 = vrcp.f32 %v1153_v7  ;;  %v1163_v31 = vand.u32 2147483647, %v1153_v7  ;;  %vm1142_vm15 = vweird.f32 %v1136_v10  ;;  %vm1159_vm2 = vweird.f32 %v1153_v7 }
 0x39d   : >> { %v1149_v33 = vor.u32 1.1754944e-38, %v1148_v13  ;;  %vm1147_vm3 = vcmp.eq.f32.partialorder %v1146_v16, 8.507059e+37  ;;  %v1166_v42 = vor.u32 1.1754944e-38, %v1165_v17  ;;  %v2338_v13 = vmov 0.0  }
 0x39e   : >> { %vm1164_vm4 = vcmp.eq.f32.partialorder %v1163_v31, 8.507059e+37  ;;  %v1132_v17 = vsel %vm1131_vm7, -1.0, %v2338_v13 }
 0x3a1   : >> { %v2071_v8 = vpop.eup %2070 }
 0x3a2   : >> { %v2073_v9 = vpop.eup %2072  ;;  %v1138_v62 = vmul.f32 %v2071_v8, %v1136_v10  ;;  %vm1143_vm13 = vweird.f32 %v2071_v8 }
 0x3a3   : >> { %v1155_v11 = vmul.f32 %v2073_v9, %v1153_v7  ;;  %vm1160_vm14 = vweird.f32 %v2073_v9  ;;  %vm1144_vm1 = vmor %vm1142_vm15, %vm1143_vm13 }
 0x3a4   : >> { %v1139_v0 = vsub.f32 1.0, %v1138_v62  ;;  %vm1161_vm0 = vmor %vm1159_vm2, %vm1160_vm14  ;;  %vm1202_vm14 = vcmask 392192  }
 0x3a5   : >> { %v1156_v14 = vsub.f32 1.0, %v1155_v11  ;;  %vm3417_vm13 = vmmov %vm3411_vm9 }
 0x3a6   : >> { %v1140_v15 = vmul.f32 %v2071_v8, %v1139_v0  ;;  %1745 = vmatmul.msk.f32.gmra.mxu0 %vm3417_vm13, %v2315_v54  ;;  %vm3418_vm15 = vmmov %vm3411_vm9  ;;  %v1000_v54 = vld [vmem:[%s995_s0 + $0x20] sm:$0xff] }
 0x3a7   : >> { %v1157_v30 = vmul.f32 %v2073_v9, %v1156_v14  ;;  %v1171_v14 = vsel %vm1135_vm5, 0.7853982, %v2338_v13  ;;  %vm3419_vm2 = vmmov %vm3411_vm9  ;;  %1404 = vmatpush.msra.mxu2 %v1000_v54 }
 0x3a8   : >> { %v1141_v32 = vadd.f32 %v2071_v8, %v1140_v15  ;;  %v1172_v16 = vsel %vm1134_vm6, 1.5707964, %v1171_v14  ;;  %vm3447_vm13 = vmmov (%p3187_p0), %vm3445_vm11 }
 0x3a9   : >> { %v1158_v34 = vadd.f32 %v2073_v9, %v1157_v30 }
 0x3aa   : >> { %v1145_v35 = vsel %vm1144_vm1, %v2071_v8, %v1141_v32  ;;  %v1133_v32 = vsel %vm1130_vm8, 1.0, %v1132_v17  ;;  %vm1204_vm1 = vcmask 64512  }
 0x3ab   : >> { %v1150_v23 = vsel %vm1147_vm3, %v1149_v33, %v1145_v35  ;;  %v1162_v25 = vsel %vm1161_vm0, %v2073_v9, %v1158_v34  ;;  %vm3420_vm3 = vmmov %vm3419_vm2 }
 0x3ac   : >> { %v1151_v2 = vmul.f32 -1.0, %v1150_v23  ;;  %v1167_v18 = vsel %vm1164_vm4, %v1166_v42, %v1162_v25  ;;  %vm3421_vm0 = vmmov %vm3419_vm2 }
 0x3ad   : >> { %v1168_v50 = vmul.f32 %v1759_v24, %v1167_v18  ;;  %vm3422_vm4 = vmmov %vm3421_vm0 }
 0x3ae   : >> { %1746 = vmatmul.msk.f32.gmra.mxu0 %vm3419_vm2, %v2311_v60  ;;  %vm3425_vm7 = vmmov %vm3421_vm0  ;;  %v999_v60 = vld [vmem:[%s995_s0 + $0x18] sm:$0xff] }
 0x3af   : >> { %v1169_v26 = vsel %vm1135_vm5, %v1168_v50, %v1129_v6  ;;  %vm3423_vm5 = vmmov %vm3421_vm0  ;;  %1405 = vmatpush.msra.mxu2 %v999_v60 }
 0x3b0   : >> { %v1170_v5 = vsel %vm1134_vm6, %v1151_v2, %v1169_v26  ;;  %vm3424_vm6 = vmmov %vm3421_vm0 }
 0x3b1   : >> { %v1173_v19 = vmul.f32 %v1170_v5, %v1170_v5  ;;  %vm3426_vm8 = vmmov %vm3421_vm0 }
 0x3b2   : >> { %vm3427_vm9 = vmmov %vm3421_vm0 }
 0x3b3   : >> { %v1174_v10 = vmul.f32 0.080537446, %v1173_v19 }
 0x3b5   : >> { %v1760_v62 = vadd.f32 -0.13877685, %v1174_v10 }
 0x3b6   : >> { %1747 = vmatmul.msk.f32.gmra.mxu0 %vm3420_vm3, %v2307_v55  ;;  %v998_v55 = vld [vmem:[%s995_s0 + $0x10] sm:$0xff] }
 0x3b7   : >> { %v1176_v11 = vmul.f32 %v1760_v62, %v1173_v19  ;;  %1406 = vmatpush.msra.mxu2 %v998_v55 }
 0x3b9   : >> { %v1177_v7 = vadd.f32 0.19977711, %v1176_v11 }
 0x3bb   : >> { %v1178_v8 = vmul.f32 %v1177_v7, %v1173_v19 }
 0x3bd   : >> { %v1761_v0 = vadd.f32 -0.3333295, %v1178_v8 }
 0x3be   : >> { %1748 = vmatmul.msk.f32.gmra.mxu0 %vm3421_vm0, %v2303_v56  ;;  %v997_v56 = vld [vmem:[%s995_s0 + $0x8] sm:$0xff] }
 0x3bf   : >> { %v1180_v15 = vmul.f32 %v1761_v0, %v1173_v19  ;;  %1407 = vmatpush.msra.mxu2 %v997_v56 }
 0x3c1   : >> { %v1181_v9 = vmul.f32 %v1180_v15, %v1170_v5 }
 0x3c3   : >> { %v1182_v30 = vadd.f32 %v1181_v9, %v1172_v16 }
 0x3c5   : >> { %v1183_v31 = vadd.f32 %v1182_v30, %v1170_v5 }
 0x3c6   : >> { %1749 = vmatmul.msk.f32.gmra.mxu0 %vm3422_vm4, %v2299_v57  ;;  %v996_v57 = vld [vmem:[%s995_s0] sm:$0xff]  ;;  %s2109_s0 = scalar_lea.hbm (%p3187_p0), %s3332_s9, 8 }
 0x3c7   : >> { %v1184_v6 = vmul.f32 %v1183_v31, %v1133_v32  ;;  %1408 = vmatpush.msra.mxu2 %v996_v57 }
 0x3c9   : >> { %v1185_v33 = vmul.f32 0.31830987, %v1184_v6 }
 0x3cb   : >> { %v1186_v34 = vadd.f32 0.5, %v1185_v33 }
 0x3cd   : >> { %1189 = vrot.lane.b32.xlu0 %v1186_v34, %s2339_s27  ;;  %v1187_v35 = vsub.f32 1.0, %v1186_v34  ;;  %s2103_s27 = sshra.s32 (%p3187_p0), %s1500_s17, 4  ;;  %s2104_s27 = int_to_ptr.hbm [resolvable:$true] %s2103_s27 }
 0x3ce   : >> { %1750 = vmatmul.msk.f32.gmra.mxu0 %vm3423_vm5, %v2295_v59  ;;  %v1072_v59 = vpop.f32.mrf.mxu0  ;;  %p2110_p4 = scmp.lt.s32.totalorder (%p3187_p0), %s2104_s27, %s3332_s9 }
 0x3cf   : >> { %1193 = vrot.lane.b32.xlu1 %v1187_v35, %s2337_s11  ;;  %s1514_s11 = scalar_lea.hbm (%p3187_p0), %s3333_s10, %s1817_s20  ;;  %s1481_s20 = scalar_lea.sflag (%p3187_p0), [#allocation3], %s2532_s30 }
 0x3d0   : > { %s1517_s28 = sshll.u32 (%p3187_p0), %s1514_s11, 4  ;;  %s3274_s28 = int_to_ptr.hbm [resolvable:$true] %s1517_s28 }
 0x3d6   : >> { %1751 = vmatmul.msk.f32.gmra.mxu0 %vm3424_vm6, %v2291_v61  ;;  %v1075_v61 = vpop.f32.mrf.mxu0 }
 0x3d7   : >> { %1196 = vrot.lane.b32.xlu1 %v1187_v35, %s2340_s12  ;;  %s2105_s12 = scalar_lea.hbm (%p3187_p0), %s2104_s27, 4 }
 0x3d8   : > { %p2106_p1 = scmp.ne.s32.totalorder (%p3187_p0), %s2104_s27, %s2105_s12  ;;  %p2111_p7 = scmp.lt.s32.totalorder (%p3187_p0), %s2109_s0, %s2105_s12 }
 0x3da   : > { %p2107_p2 = pnand (%p3187_p0), %p2106_p1, %p2438_p5  ;;  %p2112_p8 = por (%p3187_p0), %p2111_p7, %p2110_p4 }
 0x3dc   : > { %p2108_p3 = pneg (%p3187_p0), %p2107_p2 }
 0x3de   : >> { %1752 = vmatmul.msk.f32.gmra.mxu0 %vm3425_vm7, %v2287_v63  ;;  %v1078_v63 = vpop.f32.mrf.mxu0  ;;  %p2113_p9 = pnand (%p3187_p0), %p2112_p8, %p2108_p3 }
 0x3e6   : >> { %1753 = vmatmul.msk.f32.gmra.mxu0 %vm3426_vm8, %v2283_v1 }
 0x3ee   : >> { %1754 = vmatmul.msk.f32.gmra.mxu0 %vm3427_vm9, %v2279_v3 }
 0x423   : >> { %v1081_v18 = vpop.f32.mrf.mxu0 }
 0x42b   : >> { %v1084_v5 = vpop.f32.mrf.mxu0 }
 0x433   : >> { %v1087_v11 = vpop.f32.mrf.mxu0 }
 0x43b   : >> { %v1090_v13 = vpop.f32.mrf.mxu0 }
 0x43f   : >> { %v1190_v42 = vpop.permute.xlu0 %1189 }
 0x440   : >> { %v1200_v23 = vsel %vm1199_vm12, %v1190_v42, %v1186_v34  ;;  %vm3446_vm12 = vmmov (%p3187_p0), %vm3445_vm11 }
 0x441   : >> { %v1194_v20 = vpop.permute.xlu1 %1193 }
 0x442   : >> { %v1201_v24 = vsel %vm3418_vm15, %v1200_v23, %v1194_v20  ;;  %vm3449_vm15 = vmmov (%p3187_p0), %vm3445_vm11 }
 0x443   : >> { %v1093_v9 = vpop.f32.mrf.mxu0 }
 0x449   : >> { %v1197_v25 = vpop.permute.xlu1 %1196 }
 0x44a   : >> { %v1203_v2 = vsel %vm1202_vm14, %v1201_v24, %v1197_v25  ;;  %vm3448_vm14 = vmmov (%p3187_p0), %vm3445_vm11 }
 0x44b   : >> { %1271 = vmatpush.msra.mxu1 %v1203_v2  ;;  %1822 = vmatpush.msrb.mxu3 %v1203_v2  ;;  %v1096_v30 = vpop.f32.mrf.mxu0 }
 0x44c   : >> { %1762 = vmatmul.msk.f32.vlgmr.msra.gmra.mxu1 %vm1204_vm1, %v2885_v36  ;;  %1776 = vmatmul.msk.f32.vlgmr.msrb.gmra.mxu3 %vm1204_vm1, %v2959_v12 }
 0x44d   : >> { %1823 = vmatpush.msra.mxu3 %v1003_v51 }
 0x44f   : >> { %1824 = vmatpush.msra.mxu3 %v1002_v52 }
 0x451   : >> { %1825 = vmatpush.msra.mxu3 %v1001_v53 }
 0x453   : >> { %1826 = vmatpush.msra.mxu3 %v1000_v54  ;;  %v1099_v33 = vpop.f32.mrf.mxu0 }
 0x454   : >> { %1763 = vmatmul.msk.f32.gmra.mxu1 %vm1204_vm1, %v2890_v37  ;;  %1777 = vmatmul.msk.f32.gmra.mxu3 %vm1204_vm1, %v2964_v21 }
 0x455   : >> { %1827 = vmatpush.msra.mxu3 %v999_v60 }
 0x457   : >> { %1828 = vmatpush.msra.mxu3 %v998_v55 }
 0x459   : >> { %1829 = vmatpush.msra.mxu3 %v997_v56 }
 0x45b   : >> { %1830 = vmatpush.msra.mxu3 %v996_v57  ;;  %v1102_v42 = vpop.f32.mrf.mxu0 }
 0x45c   : >> { %1764 = vmatmul.msk.f32.gmra.mxu1 %vm1204_vm1, %v2895_v47  ;;  %1778 = vmatmul.msk.f32.gmra.mxu3 %vm1204_vm1, %v2970_v22 }
 0x463   : >> { %v1105_v25 = vpop.f32.mrf.mxu0 }
 0x464   : >> { %1765 = vmatmul.msk.f32.gmra.mxu1 %vm1204_vm1, %v2900_v38 }
 0x46b   : >> { %v1108_v52 = vpop.f32.mrf.mxu0 }
 0x46c   : >> { %1766 = vmatmul.msk.f32.gmra.mxu1 %vm1204_vm1, %v2905_v58 }
 0x474   : >> { %1767 = vmatmul.msk.f32.gmra.mxu1 %vm1204_vm1, %v2911_v39 }
 0x47c   : >> { %1768 = vmatmul.msk.f32.gmra.mxu1 %vm1204_vm1, %v2916_v40 }
 0x484   : >> { %1769 = vmatmul.msk.f32.gmra.mxu1 %vm1204_vm1, %v2921_v41 }
 0x48c   : >> { %1770 = vmatmul.msk.f32.gmra.mxu1 %vm1204_vm1, %v2926_v44 }
 0x494   : >> { %1771 = vmatmul.msk.f32.gmra.mxu1 %vm1204_vm1, %v2934_v43 }
 0x49c   : >> { %1772 = vmatmul.msk.f32.gmra.mxu1 %vm1204_vm1, %v2939_v45 }
 0x4a4   : >> { %1773 = vmatmul.msk.f32.gmra.mxu1 %vm1204_vm1, %v2944_v46 }
 0x4ac   : >> { %1774 = vmatmul.msk.f32.gmra.mxu1 %vm1204_vm1, %v2949_v48 }
 0x4b4   : >> { %1775 = vmatmul.msk.f32.gmra.mxu1 %vm1204_vm1, %v2954_v49  ;;  %vm3450_vm1 = vmmov (%p3187_p0), %vm3445_vm11 }
 0x4b5   : > { %vm3451_vm2 = vmmov (%p3187_p0), %vm3450_vm1 }
 0x4b6   : > { %vm3452_vm3 = vmmov (%p3187_p0), %vm3450_vm1 }
 0x4b7   : > { %vm3453_vm0 = vmmov (%p3187_p0), %vm3450_vm1 }
 0x4b8   : > { %vm3454_vm4 = vmmov (%p3187_p0), %vm3453_vm0 }
 0x4b9   : > { %vm3455_vm5 = vmmov (%p3187_p0), %vm3453_vm0 }
 0x4ba   : > { %vm3456_vm6 = vmmov (%p3187_p0), %vm3453_vm0 }
 0x4bb   : > { %vm3457_vm7 = vmmov (%p3187_p0), %vm3453_vm0 }
 0x4bc   : > { %vm3458_vm8 = vmmov (%p3187_p0), %vm3453_vm0 }
 0x4bd   : > { %vm3459_vm9 = vmmov (%p3187_p0), %vm3453_vm0 }
 0x4c9   : >> { %v1273_v1 = vpop.f32.mrf.mxu1 }
 0x4ca   : >> { %v1324_v3 = vmul.f32 %v1273_v1, %v1072_v59 }
 0x4cc   : >> { %1779 = vmatmul.msk.f32.vlgmr.msra.gmra.mxu2 %vm1341_vm10, %v1324_v3 }
 0x4cf   : >> { %v1315_v56 = vpop.f32.mrf.mxu3 }
 0x4d0   : >> { %v1338_v57 = vmul.f32 %v1315_v56, %v3090_v28 }
 0x4d1   : >> { %v1276_v50 = vpop.f32.mrf.mxu1 }
 0x4d2   : >> { %v1325_v26 = vmul.f32 %v1276_v50, %v1075_v61 }
 0x4d4   : >> { %1780 = vmatmul.msk.f32.gmra.mxu2 %vm1341_vm10, %v1325_v26 }
 0x4d7   : >> { %v1318_v59 = vpop.f32.mrf.mxu3 }
 0x4d8   : >> { %v1339_v61 = vmul.f32 %v1318_v59, %v3092_v29 }
 0x4d9   : >> { %v1279_v19 = vpop.f32.mrf.mxu1 }
 0x4da   : >> { %v1326_v10 = vmul.f32 %v1279_v19, %v1078_v63 }
 0x4dc   : >> { %1781 = vmatmul.msk.f32.gmra.mxu2 %vm1341_vm10, %v1326_v10 }
 0x4df   : >> { %v1321_v63 = vpop.f32.mrf.mxu3 }
 0x4e0   : >> { %v1340_v1 = vmul.f32 %v1321_v63, %v3094_v4 }
 0x4e1   : >> { %v1282_v62 = vpop.f32.mrf.mxu1 }
 0x4e2   : >> { %v1327_v7 = vmul.f32 %v1282_v62, %v1081_v18 }
 0x4e4   : >> { %1782 = vmatmul.msk.f32.gmra.mxu2 %vm1341_vm10, %v1327_v7 }
 0x4e9   : >> { %v1285_v8 = vpop.f32.mrf.mxu1 }
 0x4ea   : >> { %v1328_v0 = vmul.f32 %v1285_v8, %v1084_v5 }
 0x4ec   : >> { %1783 = vmatmul.msk.f32.gmra.mxu2 %vm1341_vm10, %v1328_v0 }
 0x4f1   : >> { %v1288_v14 = vpop.f32.mrf.mxu1 }
 0x4f2   : >> { %v1329_v15 = vmul.f32 %v1288_v14, %v1087_v11 }
 0x4f4   : >> { %1784 = vmatmul.msk.f32.gmra.mxu2 %vm1341_vm10, %v1329_v15 }
 0x4f9   : >> { %v1291_v16 = vpop.f32.mrf.mxu1 }
 0x4fa   : >> { %v1330_v17 = vmul.f32 %v1291_v16, %v1090_v13 }
 0x4fc   : >> { %1785 = vmatmul.msk.f32.gmra.mxu2 %vm1341_vm10, %v1330_v17 }
 0x501   : >> { %v1294_v31 = vpop.f32.mrf.mxu1 }
 0x502   : >> { %v1331_v32 = vmul.f32 %v1294_v31, %v1093_v9 }
 0x504   : >> { %1786 = vmatmul.msk.f32.gmra.mxu2 %vm1341_vm10, %v1331_v32 }
 0x509   : >> { %v1297_v6 = vpop.f32.mrf.mxu1 }
 0x50a   : >> { %v1332_v34 = vmul.f32 %v1297_v6, %v1096_v30 }
 0x50c   : >> { %1787 = vmatmul.msk.f32.gmra.mxu2 %vm1341_vm10, %v1332_v34 }
 0x511   : >> { %v1300_v35 = vpop.f32.mrf.mxu1 }
 0x512   : >> { %v1333_v20 = vmul.f32 %v1300_v35, %v1099_v33 }
 0x514   : >> { %1788 = vmatmul.msk.f32.gmra.mxu2 %vm1341_vm10, %v1333_v20 }
 0x519   : >> { %v1303_v23 = vpop.f32.mrf.mxu1 }
 0x51a   : >> { %v1334_v24 = vmul.f32 %v1303_v23, %v1102_v42 }
 0x51c   : >> { %1789 = vmatmul.msk.f32.gmra.mxu2 %vm1341_vm10, %v1334_v24 }
 0x521   : >> { %v1306_v2 = vpop.f32.mrf.mxu1 }
 0x522   : >> { %v1335_v51 = vmul.f32 %v1306_v2, %v1105_v25 }
 0x524   : >> { %1790 = vmatmul.msk.f32.gmra.mxu2 %vm1341_vm10, %v1335_v51 }
 0x529   : >> { %v1309_v53 = vpop.f32.mrf.mxu1 }
 0x52a   : >> { %v1336_v54 = vmul.f32 %v1309_v53, %v1108_v52 }
 0x52c   : >> { %1791 = vmatmul.msk.f32.vlgmr.msra.gmra.mxu3 %vm1341_vm10, %v1336_v54 }
 0x531   : >> { %v1312_v60 = vpop.f32.mrf.mxu1 }
 0x532   : >> { %v1337_v55 = vmul.f32 %v1312_v60, %v3088_v27 }
 0x534   : >> { %1792 = vmatmul.msk.f32.gmra.mxu3 %vm1341_vm10, %v1337_v55 }
 0x53c   : >> { %1793 = vmatmul.msk.f32.gmra.mxu3 %vm1341_vm10, %v1338_v57 }
 0x544   : >> { %1794 = vmatmul.msk.f32.gmra.mxu3 %vm1341_vm10, %v1339_v61 }
 0x54c   : >> { %1795 = vmatmul.msk.f32.gmra.mxu3 %vm1341_vm10, %v1340_v1  ;;  %vm3460_vm10 = vmmov (%p3187_p0), %vm3453_vm0 }
 0x54f   : >> { %v1410_v18 = vpop.f32.mrf.mxu2  }
 0x550   : >> { %v3444_v51 = vmov %v1410_v18  ;;  %1461 = vst.msk [vmem:[%s2980_s18] sm:$0xff] (%p3187_p0), %vm3445_vm11, %v1410_v18 }
 0x557   : >> { %v1413_v50 = vpop.f32.mrf.mxu2  }
 0x558   : >> { %v3443_v52 = vmov %v1413_v50  ;;  %1462 = vst.msk [vmem:[%s2980_s18 + $0x8] sm:$0xff] (%p3187_p0), %vm3446_vm12, %v1413_v50 }
 0x55f   : >> { %v1416_v27 = vpop.f32.mrf.mxu2  }
 0x560   : >> { %v3442_v53 = vmov %v1416_v27  ;;  %1463 = vst.msk [vmem:[%s2980_s18 + $0x10] sm:$0xff] (%p3187_p0), %vm3447_vm13, %v1416_v27 }
 0x567   : >> { %v1419_v26 = vpop.f32.mrf.mxu2  }
 0x568   : >> { %v3441_v54 = vmov %v1419_v26  ;;  %1464 = vst.msk [vmem:[%s2980_s18 + $0x18] sm:$0xff] (%p3187_p0), %vm3448_vm14, %v1419_v26 }
 0x56f   : >> { %v1422_v5 = vpop.f32.mrf.mxu2  }
 0x570   : >> { %v3440_v60 = vmov %v1422_v5  ;;  %1796 = vst.msk [vmem:[%s2980_s18 + $0x20] sm:$0xff] (%p3187_p0), %vm3449_vm15, %v1422_v5 }
 0x577   : >> { %v1425_v62 = vpop.f32.mrf.mxu2  }
 0x578   : >> { %v3439_v55 = vmov %v1425_v62  ;;  %1797 = vst.msk [vmem:[%s2980_s18 + $0x28] sm:$0xff] (%p3187_p0), %vm3450_vm1, %v1425_v62 }
 0x57f   : >> { %v1428_v11 = vpop.f32.mrf.mxu2  }
 0x580   : >> { %v3438_v56 = vmov %v1428_v11  ;;  %1798 = vst.msk [vmem:[%s2980_s18 + $0x30] sm:$0xff] (%p3187_p0), %vm3451_vm2, %v1428_v11 }
 0x587   : >> { %v1431_v28 = vpop.f32.mrf.mxu2  }
 0x588   : >> { %v3437_v57 = vmov %v1431_v28  ;;  %1799 = vst.msk [vmem:[%s2980_s18 + $0x38] sm:$0xff] (%p3187_p0), %vm3452_vm3, %v1431_v28 }
 0x58f   : >> { %v1434_v7 = vpop.f32.mrf.mxu2  }
 0x590   : >> { %v3436_v59 = vmov %v1434_v7  ;;  %1800 = vst.msk [vmem:[%s2980_s18 + $0x40] sm:$0xff] (%p3187_p0), %vm3453_vm0, %v1434_v7 }
 0x597   : >> { %v1437_v8 = vpop.f32.mrf.mxu2  }
 0x598   : >> { %v3435_v61 = vmov %v1437_v8  ;;  %1801 = vst.msk [vmem:[%s2980_s18 + $0x48] sm:$0xff] (%p3187_p0), %vm3454_vm4, %v1437_v8 }
 0x59f   : >> { %v1440_v0 = vpop.f32.mrf.mxu2  }
 0x5a0   : >> { %v3434_v63 = vmov %v1440_v0  ;;  %1802 = vst.msk [vmem:[%s2980_s18 + $0x50] sm:$0xff] (%p3187_p0), %vm3455_vm5, %v1440_v0 }
 0x5a7   : >> { %v1443_v13 = vpop.f32.mrf.mxu2  }
 0x5a8   : >> { %v3433_v1 = vmov %v1443_v13  ;;  %1803 = vst.msk [vmem:[%s2980_s18 + $0x58] sm:$0xff] (%p3187_p0), %vm3456_vm6, %v1443_v13 }
 0x5af   : >> { %v1446_v29 = vpop.f32.mrf.mxu3  }
 0x5b0   : >> { %v3432_v3 = vmov %v1446_v29  ;;  %1804 = vst.msk [vmem:[%s2980_s18 + $0x60] sm:$0xff] (%p3187_p0), %vm3457_vm7, %v1446_v29 }
 0x5b7   : >> { %v1449_v14 = vpop.f32.mrf.mxu3  }
 0x5b8   : >> { %v3431_v19 = vmov %v1449_v14  ;;  %1805 = vst.msk [vmem:[%s2980_s18 + $0x68] sm:$0xff] (%p3187_p0), %vm3458_vm8, %v1449_v14 }
 0x5bf   : >> { %v1452_v15 = vpop.f32.mrf.mxu3  }
 0x5c0   : >> { %v3430_v20 = vmov %v1452_v15  ;;  %1806 = vst.msk [vmem:[%s2980_s18 + $0x70] sm:$0xff] (%p3187_p0), %vm3459_vm9, %v1452_v15 }
 0x5c7   : >> { %v1455_v9 = vpop.f32.mrf.mxu3  }
 0x5c8   : >> { %v3429_v10 = vmov %v1455_v9  ;;  %1807 = vst.msk [vmem:[%s2980_s18 + $0x78] sm:$0xff] (%p3187_p0), %vm3460_vm10, %v1455_v9 }
 0x5cb   : > { %969 = sbr.rel (!%p3187_p0) target bundleno = 634 (0x27a), region = 137 }
 0x5cf   : >> { %v1458_v25 = vpop.f32.mrf.mxu3  }
 0x5d0   : > { %2116 = shalt.err (!%p2113_p9)
}
 0x5d1   : > { %s2341_s18 = smov 16   ;;  %s2342_s2 = smov 1  }
 0x5d2   : > { %1835 = dma.vmem_to_hbm [thread:$0]  (%p2438_p5), %s3260_s25, 64, %s1500_s17, %s1481_s20, %s2341_s18, %s2341_s18, %s2342_s2  }
 0x5d3   : > { %s1486_s3 = scalar_lea.sflag [#allocation7], %s2532_s30  ;;  %s2131_s21 = sshra.s32 %s3274_s28, 4  ;;  %s2132_s21 = int_to_ptr.hbm [resolvable:$true] %s2131_s21 }
 0x5d4   : > { %s2133_s26 = scalar_lea.hbm %s2132_s21, 128  ;;  %s2137_s12 = scalar_lea.hbm %s3333_s10, 256 }
 0x5d5   : > { %p2134_p10 = scmp.ne.s32.totalorder %s2132_s21, %s2133_s26  ;;  %p2138_p13 = scmp.lt.s32.totalorder %s2132_s21, %s3333_s10 }
 0x5d6   : > { %p2139_p0 = scmp.lt.s32.totalorder %s2137_s12, %s2133_s26 }
 0x5d7   : > { %p2135_p11 = pnand %p2134_p10, %p2438_p5 }
 0x5d8   : > { %p2140_p1 = por %p2139_p0, %p2138_p13 }
 0x5d9   : > { %p2136_p12 = pneg %p2135_p11 }
 0x5db   : > { %p2141_p2 = pnand %p2140_p1, %p2136_p12 }
 0x5dd   : > { %2144 = shalt.err (!%p2141_p2)
}
 0x5de   : > { %s2343_s2 = smov 128   ;;  %s2344_s30 = smov 8  }
 0x5df   : > { %1836 = dma.vmem_to_hbm [thread:$0]  (%p2438_p5), %s3272_s29, 2048, %s3274_s28, %s1486_s3, %s2343_s2, %s2343_s2, %s2344_s30  }
 0x5e0 PF: > { %p1852_p3 = scmp.ge.s32.totalorder %s2259_s16, 2  ;;  %s1532_s25 = sand.u32 1, %s2247_s13  }
 0x5e1   : > { %s1533_s17 = scalar_lea.sflag [#allocation3], %s1532_s25 }
 0x5e2   : > { %p1844_p4 = pnand %p1852_p3, %p2442_p6 }
 0x5e4   : > { %p1845_p7 = pneg %p1844_p4 }
 0x5e6   : > { %2238 = dma.done.wait (%p1845_p7), %s1533_s17, 64  }
 0x5e7   : > { %2240 = vsyncadd (%p1845_p7), %s1533_s17, 4294967232  ;;  %s1543_s20 = scalar_lea.sflag [#allocation7], %s1532_s25 }
 0x5e8   : > { %2242 = dma.done.wait (%p1845_p7), %s1543_s20, 2048  }
 0x5e9   : > { %2244 = vsyncadd (%p1845_p7), %s1543_s20, 4294965248  ;;  %p25_p5 = scmp.ge.s32.totalorder %s2425_s19, 4   ;;  %s3461_s13 = smov %s2251_s14 }
 0x5ea   : > { %s3462_s14 = smov %s2255_s15  ;;  %s3463_s15 = smov %s2436_s22 }
 0x5eb   : > { %s3464_s16 = smov %s2425_s19  ;;  %27 = sbr.rel (!%p25_p5) target bundleno = 11 (0xb), region = 148 }
 0x5f0   :  { %1549 = vsyncpa [#allocation3], 1 }
 0x5f1   :  { %1551 = vsyncpa [#allocation3 + $0x1], 1 }
 0x5f2   :  { %1552 = vsyncpa [#allocation7], 1 }
 0x5f3   :  { %1554 = vsyncpa [#allocation7 + $0x1], 1 }
 0x5f4   :  { %1555 = vsyncpa [#allocation4], 1 }
 0x5f5   :  { %1557 = vsyncpa [#allocation4 + $0x1], 1 }

</bundles_post_ra>
